<compile_context>
chip_gen: v7x
topology: tpu7x:2x2x1
jax: 0.10.0
libtpu: 0.0.40
codegen_flags: <defaults>
</compile_context>

<pallas_src>
import functools
import math

import numpy as np
import jax
import jax.numpy as jnp
from jax.experimental import pallas as pl
from jax.experimental.pallas import tpu as pltpu


# ----------------------------- tiling helper --------------------------------

def _pick_tile(dim, target, granule):
    """Largest tile <= target that is a multiple of `granule` and divides `dim`.

    Falls back to the full extent (block == array dim is always legal)."""
    if dim <= target:
        return dim
    t = (target // granule) * granule
    while t >= granule:
        if dim % t == 0:
            return t
        t -= granule
    return dim


# ----------------------------- Pallas kernels -------------------------------

def _matmul_kernel(x_ref, w_ref, b_ref, *rest, activation, nk, has_residual):
    """Tiled y = act(x @ w + b) [+ residual]; f32 accumulator over the K axis."""
    if has_residual:
        r_ref, o_ref, acc_ref = rest
    else:
        o_ref, acc_ref = rest

    @pl.when(pl.program_id(2) == 0)
    def _():
        acc_ref[...] = jnp.zeros_like(acc_ref)

    acc_ref[...] += jnp.dot(x_ref[...].astype(jnp.bfloat16), w_ref[...],
                            preferred_element_type=jnp.float32)

    @pl.when(pl.program_id(2) == nk - 1)
    def _():
        y = acc_ref[...] + b_ref[...]
        if activation == "relu":
            y = jnp.maximum(y, 0.0)
        if has_residual:
            y = y + r_ref[...]
        o_ref[...] = y


def linear(x2d, w_bf16, b, residual=None, activation=None,
           tm=256, tn=256, tk=512):
    """x2d: [M, K] f32, w_bf16: [K, N] bf16, b: [N] f32 -> [M, N] f32."""
    M, K = x2d.shape
    N = w_bf16.shape[1]
    tm = _pick_tile(M, tm, 8)
    tn = _pick_tile(N, tn, 128)
    tk = _pick_tile(K, tk, 128)
    nk = K // tk

    in_specs = [
        pl.BlockSpec((tm, tk), lambda i, j, k: (i, k)),
        pl.BlockSpec((tk, tn), lambda i, j, k: (k, j)),
        pl.BlockSpec((1, tn), lambda i, j, k: (0, j)),
    ]
    args = [x2d, w_bf16, b.reshape(1, N)]
    if residual is not None:
        in_specs.append(pl.BlockSpec((tm, tn), lambda i, j, k: (i, j)))
        args.append(residual)

    kernel = functools.partial(_matmul_kernel, activation=activation, nk=nk,
                               has_residual=residual is not None)
    return pl.pallas_call(
        kernel,
        out_shape=jax.ShapeDtypeStruct((M, N), jnp.float32),
        grid=(M // tm, N // tn, nk),
        in_specs=in_specs,
        out_specs=pl.BlockSpec((tm, tn), lambda i, j, k: (i, j)),
        scratch_shapes=[pltpu.VMEM((tm, tn), jnp.float32)],
        compiler_params=pltpu.CompilerParams(
            dimension_semantics=("parallel", "parallel", "arbitrary")),
    )(*args)


def _norm_matmul_kernel(x_ref, a_ref, g_ref, w_ref, b_ref, o_ref, *, eps, d):
    """Fused LayerNorm (unbiased std, eps on std) + projection."""
    x = x_ref[...]
    mean = jnp.mean(x, axis=-1, keepdims=True)
    xc = x - mean
    var = jnp.sum(xc * xc, axis=-1, keepdims=True) * (1.0 / (d - 1))
    inv = pl.reciprocal(jnp.sqrt(var) + eps, approx=True)
    xn = a_ref[...] * xc * inv + g_ref[...]
    o_ref[...] = (jnp.dot(xn.astype(jnp.bfloat16), w_ref[...],
                          preferred_element_type=jnp.float32) + b_ref[...])


def norm_linear(x2d, norm_p, w_bf16, b, eps=1e-6, tm=256, tn=256):
    """LayerNorm over the full feature dim fused with x_norm @ w + b."""
    M, D = x2d.shape
    N = w_bf16.shape[1]
    tm = _pick_tile(M, tm, 8)
    tn = _pick_tile(N, tn, 128)
    kernel = functools.partial(_norm_matmul_kernel, eps=eps, d=D)
    return pl.pallas_call(
        kernel,
        out_shape=jax.ShapeDtypeStruct((M, N), jnp.float32),
        grid=(M // tm, N // tn),
        in_specs=[
            pl.BlockSpec((tm, D), lambda i, j: (i, 0)),
            pl.BlockSpec((1, D), lambda i, j: (0, 0)),
            pl.BlockSpec((1, D), lambda i, j: (0, 0)),
            pl.BlockSpec((D, tn), lambda i, j: (0, j)),
            pl.BlockSpec((1, tn), lambda i, j: (0, j)),
        ],
        out_specs=pl.BlockSpec((tm, tn), lambda i, j: (i, j)),
        compiler_params=pltpu.CompilerParams(
            dimension_semantics=("parallel", "parallel")),
    )(x2d, norm_p["alpha"].reshape(1, D), norm_p["bias"].reshape(1, D),
      w_bf16, b.reshape(1, N))


def _norm_ffn_kernel(x_ref, a_ref, g_ref, w1_ref, b1_ref, w2_ref, b2_ref,
                     o_ref, *, eps, d):
    """x + W2 @ relu(W1 @ norm(x) + b1) + b2 — whole sublayer in one kernel."""
    x = x_ref[...]
    mean = jnp.mean(x, axis=-1, keepdims=True)
    xc = x - mean
    var = jnp.sum(xc * xc, axis=-1, keepdims=True) * (1.0 / (d - 1))
    inv = pl.reciprocal(jnp.sqrt(var) + eps, approx=True)
    xn = a_ref[...] * xc * inv + g_ref[...]
    h = jnp.dot(xn.astype(jnp.bfloat16), w1_ref[...],
                preferred_element_type=jnp.float32) + b1_ref[...]
    h = jnp.maximum(h, 0.0)
    y = jnp.dot(h.astype(jnp.bfloat16), w2_ref[...],
                preferred_element_type=jnp.float32) + b2_ref[...]
    o_ref[...] = x + y          # fused residual add


def norm_ffn_residual(x2d, norm_p, ff_p, eps=1e-6, tm=256):
    M, D = x2d.shape
    Dff = ff_p["w1"].shape[1]
    tm = _pick_tile(M, tm, 8)
    kernel = functools.partial(_norm_ffn_kernel, eps=eps, d=D)
    return pl.pallas_call(
        kernel,
        out_shape=jax.ShapeDtypeStruct((M, D), jnp.float32),
        grid=(M // tm,),
        in_specs=[
            pl.BlockSpec((tm, D), lambda i: (i, 0)),
            pl.BlockSpec((1, D), lambda i: (0, 0)),
            pl.BlockSpec((1, D), lambda i: (0, 0)),
            pl.BlockSpec((D, Dff), lambda i: (0, 0)),
            pl.BlockSpec((1, Dff), lambda i: (0, 0)),
            pl.BlockSpec((Dff, D), lambda i: (0, 0)),
            pl.BlockSpec((1, D), lambda i: (0, 0)),
        ],
        out_specs=pl.BlockSpec((tm, D), lambda i: (i, 0)),
        compiler_params=pltpu.CompilerParams(
            dimension_semantics=("parallel",)),
    )(x2d, norm_p["alpha"].reshape(1, D), norm_p["bias"].reshape(1, D),
      ff_p["w1"], ff_p["b1"].reshape(1, Dff),
      ff_p["w2"], ff_p["b2"].reshape(1, D))


def _attn_kernel(q_ref, k_ref, v_ref, m_ref, o_ref, *, scale):
    """All heads of one batch element per grid step; batched MXU contractions."""
    q = q_ref[0].astype(jnp.bfloat16)   # [H, Sq, dk]
    k = k_ref[0].astype(jnp.bfloat16)   # [H, Sk, dk]
    v = v_ref[0].astype(jnp.bfloat16)   # [H, Sk, dk]
    m = m_ref[0]                        # [Mq, Sk], Mq in {1, Sq}
    # Contract on dk directly (no explicit k.T / XLU transpose).
    s = jnp.einsum('hqd,hkd->hqk', q, k,
                   preferred_element_type=jnp.float32) * scale
    mb = jnp.broadcast_to(m[None, :, :], s.shape)
    s = jnp.where(mb == 0.0, -1000000000.0, s)
    s = s - jnp.max(s, axis=-1, keepdims=True)       # stable softmax
    e = jnp.exp(s)
    p = e * pl.reciprocal(jnp.sum(e, axis=-1, keepdims=True), approx=True)
    o_ref[0] = jnp.einsum('hqk,hkd->hqd', p.astype(jnp.bfloat16), v,
                          preferred_element_type=jnp.float32)


def scaled_dot_attention(q, k, v, mask, scale):
    """q/k/v: [B, H, S, dk]; mask: [B, Mq, Sk] (1 = attend) -> [B, H, Sq, dk].

    Whole-sequence attention per batch element.  For long sequences a
    flash-style Sk-tiled, lane-dense (dk padded to 128) variant would be used;
    at these shapes the full tile fits VMEM comfortably."""
    B, H, Sq, dk = q.shape
    Sk = k.shape[2]
    Mq = mask.shape[1]
    kernel = functools.partial(_attn_kernel, scale=scale)
    return pl.pallas_call(
        kernel,
        out_shape=jax.ShapeDtypeStruct((B, H, Sq, dk), jnp.float32),
        grid=(B,),
        in_specs=[
            pl.BlockSpec((1, H, Sq, dk), lambda b: (b, 0, 0, 0)),
            pl.BlockSpec((1, H, Sk, dk), lambda b: (b, 0, 0, 0)),
            pl.BlockSpec((1, H, Sk, dk), lambda b: (b, 0, 0, 0)),
            pl.BlockSpec((1, Mq, Sk), lambda b: (b, 0, 0)),
        ],
        out_specs=pl.BlockSpec((1, H, Sq, dk), lambda b: (b, 0, 0, 0)),
        compiler_params=pltpu.CompilerParams(
            dimension_semantics=("parallel",)),
    )(q, k, v, mask.astype(jnp.float32))


def _norm_kernel(x_ref, a_ref, g_ref, o_ref, *, eps, d):
    x = x_ref[...]
    mean = jnp.mean(x, axis=-1, keepdims=True)
    xc = x - mean
    var = jnp.sum(xc * xc, axis=-1, keepdims=True) * (1.0 / (d - 1))
    inv = pl.reciprocal(jnp.sqrt(var) + eps, approx=True)
    o_ref[...] = a_ref[...] * xc * inv + g_ref[...]


def layer_norm(x2d, norm_p, eps=1e-6, tm=1024):
    M, D = x2d.shape
    tm = _pick_tile(M, tm, 8)
    kernel = functools.partial(_norm_kernel, eps=eps, d=D)
    return pl.pallas_call(
        kernel,
        out_shape=jax.ShapeDtypeStruct((M, D), jnp.float32),
        grid=(M // tm,),
        in_specs=[
            pl.BlockSpec((tm, D), lambda i: (i, 0)),
            pl.BlockSpec((1, D), lambda i: (0, 0)),
            pl.BlockSpec((1, D), lambda i: (0, 0)),
        ],
        out_specs=pl.BlockSpec((tm, D), lambda i: (i, 0)),
        compiler_params=pltpu.CompilerParams(
            dimension_semantics=("parallel",)),
    )(x2d, norm_p["alpha"].reshape(1, D), norm_p["bias"].reshape(1, D))


# ------------------------------ model pieces --------------------------------

def _split_heads(x2d, B, S, heads, dk):
    return x2d.reshape(B, S, heads, dk).transpose(0, 2, 1, 3)   # [B,H,S,dk]


def _merge_heads(x, B, S, D):
    return x.transpose(0, 2, 1, 3).reshape(B * S, D)


def self_attention_block(attn_p, norm_p, x, mask, heads):
    """x + MHA(norm(x)): fused norm+QKV projection, fused residual in out-proj."""
    B, S, D = x.shape
    dk = D // heads
    x_flat = x.reshape(B * S, D)
    qkv = norm_linear(x_flat, norm_p, attn_p["wqkv"], attn_p["bqkv"])
    qkv = qkv.reshape(B, S, 3, heads, dk)
    q = qkv[:, :, 0].transpose(0, 2, 1, 3)
    k = qkv[:, :, 1].transpose(0, 2, 1, 3)
    v = qkv[:, :, 2].transpose(0, 2, 1, 3)
    attn = scaled_dot_attention(q, k, v, mask, 1.0 / math.sqrt(dk))
    concat = _merge_heads(attn, B, S, D)
    out = linear(concat, attn_p["wo"], attn_p["bo"], residual=x_flat)
    return out.reshape(B, S, D)


def project_cross_kv(attn_p, e_out, heads):
    """K/V projections of the encoder output (hoisted: shared weights, fixed e_out)."""
    B, Sk, D = e_out.shape
    dk = D // heads
    kv = linear(e_out.reshape(B * Sk, D), attn_p["wkv"], attn_p["bkv"])
    kv = kv.reshape(B, Sk, 2, heads, dk)
    k = kv[:, :, 0].transpose(0, 2, 1, 3)
    v = kv[:, :, 1].transpose(0, 2, 1, 3)
    return k, v


def cross_attention_block(attn_p, norm_p, x, k_cross, v_cross, mask, heads):
    """x + MHA(q=norm(x), k/v=precomputed e_out projections), fused residual."""
    B, Sq, D = x.shape
    dk = D // heads
    x_flat = x.reshape(B * Sq, D)
    q = norm_linear(x_flat, norm_p, attn_p["wq"], attn_p["bq"])
    q = _split_heads(q, B, Sq, heads, dk)
    attn = scaled_dot_attention(q, k_cross, v_cross, mask, 1.0 / math.sqrt(dk))
    concat = _merge_heads(attn, B, Sq, D)
    out = linear(concat, attn_p["wo"], attn_p["bo"], residual=x_flat)
    return out.reshape(B, Sq, D)


def ffn_block(ff_p, norm_p, x):
    B, S, D = x.shape
    return norm_ffn_residual(x.reshape(B * S, D), norm_p, ff_p).reshape(B, S, D)


def encoder_layer(p, x, mask, heads):
    x = self_attention_block(p["attn"], p["norm1"], x, mask, heads)
    x = ffn_block(p["ff"], p["norm2"], x)
    return x


def decoder_layer(p, x, k_cross, v_cross, src_mask, trg_mask, heads):
    x = self_attention_block(p["attn1"], p["norm1"], x, trg_mask, heads)
    x = cross_attention_block(p["attn2"], p["norm2"], x, k_cross, v_cross,
                              src_mask, heads)
    x = ffn_block(p["ff"], p["norm3"], x)
    return x


def embed_pe(table, tokens, pe, d_model):
    # TODO(synk): the vocab gather stays in XLA (jnp.take); no Pallas gather here.
    x = jnp.take(table, tokens, axis=0) * math.sqrt(d_model)
    S = x.shape[1]
    return x + pe[:S][None, :, :]


def transformer_forward(params, src, trg, src_mask, trg_mask, *, heads, N, d_model):
    # Encoder (get_clones shares one parameter set across all N layers)
    x = embed_pe(params["enc_embed"], src, params["pe"], d_model)
    for _ in range(N):
        x = encoder_layer(params["enc_layer"], x, src_mask, heads)
    B, Ss, D = x.shape
    e_out = layer_norm(x.reshape(B * Ss, D), params["enc_norm"]).reshape(B, Ss, D)

    # Cross-attention K/V of e_out: identical every decoder layer -> compute once.
    k_cross, v_cross = project_cross_kv(params["dec_layer"]["attn2"], e_out, heads)

    # Decoder
    y = embed_pe(params["dec_embed"], trg, params["pe"], d_model)
    for _ in range(N):
        y = decoder_layer(params["dec_layer"], y, k_cross, v_cross,
                          src_mask, trg_mask, heads)

    # Final decoder norm fused into the vocab projection.
    B, St, D = y.shape
    out = norm_linear(y.reshape(B * St, D), params["dec_norm"],
                      params["out_w"], params["out_b"])
    return out.reshape(B, St, -1)


# ------------------------------ param init ----------------------------------

def init_linear(key, in_dim, out_dim):
    k1, k2 = jax.random.split(key)
    bound = 1.0 / math.sqrt(in_dim)
    w = jax.random.uniform(k1, (in_dim, out_dim), jnp.float32, -bound, bound)
    b = jax.random.uniform(k2, (out_dim,), jnp.float32, -bound, bound)
    return w, b


def init_norm(d_model):
    return {"alpha": jnp.ones((d_model,), jnp.float32),
            "bias": jnp.zeros((d_model,), jnp.float32)}


def init_mha_self(key, d_model):
    ks = jax.random.split(key, 4)
    wq, bq = init_linear(ks[0], d_model, d_model)
    wk, bk = init_linear(ks[1], d_model, d_model)
    wv, bv = init_linear(ks[2], d_model, d_model)
    wo, bo = init_linear(ks[3], d_model, d_model)
    # Fused QKV weight (bf16 MXU operand); biases stay f32.
    return {"wqkv": jnp.concatenate([wq, wk, wv], axis=1).astype(jnp.bfloat16),
            "bqkv": jnp.concatenate([bq, bk, bv], axis=0),
            "wo": wo.astype(jnp.bfloat16), "bo": bo}


def init_mha_cross(key, d_model):
    ks = jax.random.split(key, 4)
    wq, bq = init_linear(ks[0], d_model, d_model)
    wk, bk = init_linear(ks[1], d_model, d_model)
    wv, bv = init_linear(ks[2], d_model, d_model)
    wo, bo = init_linear(ks[3], d_model, d_model)
    return {"wq": wq.astype(jnp.bfloat16), "bq": bq,
            "wkv": jnp.concatenate([wk, wv], axis=1).astype(jnp.bfloat16),
            "bkv": jnp.concatenate([bk, bv], axis=0),
            "wo": wo.astype(jnp.bfloat16), "bo": bo}


def init_ff(key, d_model):
    d_ff = d_model * 4
    k1, k2 = jax.random.split(key)
    w1, b1 = init_linear(k1, d_model, d_ff)
    w2, b2 = init_linear(k2, d_ff, d_model)
    return {"w1": w1.astype(jnp.bfloat16), "b1": b1,
            "w2": w2.astype(jnp.bfloat16), "b2": b2}


def positional_encoding(max_seq_len, d_model):
    pe = np.zeros((max_seq_len, d_model), dtype=np.float32)
    for pos in range(max_seq_len):
        for i in range(0, d_model, 2):
            pe[pos, i] = math.sin(pos / 10000 ** (2 * i / d_model))
            pe[pos, i + 1] = math.cos(pos / 10000 ** (2 * i / d_model))
    return jnp.asarray(pe)


def init_params(key, src_vocab, trg_vocab, d_model, max_seq_len=80):
    keys = jax.random.split(key, 8)
    enc_embed = jax.random.normal(keys[0], (src_vocab, d_model), jnp.float32)
    enc_embed = enc_embed.at[0].set(0.0)          # padding_idx=0
    dec_embed = jax.random.normal(keys[1], (trg_vocab, d_model), jnp.float32)
    dec_embed = dec_embed.at[0].set(0.0)
    enc_layer = {"norm1": init_norm(d_model), "norm2": init_norm(d_model),
                 "attn": init_mha_self(keys[2], d_model),
                 "ff": init_ff(keys[3], d_model)}
    dec_layer = {"norm1": init_norm(d_model), "norm2": init_norm(d_model),
                 "norm3": init_norm(d_model),
                 "attn1": init_mha_self(keys[4], d_model),
                 "attn2": init_mha_cross(keys[5], d_model),
                 "ff": init_ff(keys[6], d_model)}
    out_w, out_b = init_linear(keys[7], d_model, trg_vocab)
    return {"enc_embed": enc_embed, "dec_embed": dec_embed,
            "pe": positional_encoding(max_seq_len, d_model),
            "enc_layer": enc_layer, "enc_norm": init_norm(d_model),
            "dec_layer": dec_layer, "dec_norm": init_norm(d_model),
            "out_w": out_w.astype(jnp.bfloat16), "out_b": out_b}


# --------------------------------- main --------------------------------------

if __name__ == "__main__":
    SRC_VOCAB, TRG_VOCAB = 16, 16
    D_MODEL, N_LAYERS, HEADS = 32, 2, 4
    B, S_SRC, S_TRG = 2, 8, 8

    root = jax.random.PRNGKey(0)
    kp, ks, kt = jax.random.split(root, 3)
    params = init_params(kp, SRC_VOCAB, TRG_VOCAB, D_MODEL)

    src = jax.random.randint(ks, (B, S_SRC), 1, SRC_VOCAB, dtype=jnp.int32)
    trg = jax.random.randint(kt, (B, S_TRG), 1, TRG_VOCAB, dtype=jnp.int32)

    # src_mask: [B, 1, S_src] (1 = attend); mask out last src token of batch 1
    src_mask = jnp.ones((B, 1, S_SRC), jnp.float32).at[1, 0, -1].set(0.0)
    # trg_mask: [B, S_trg, S_trg] causal mask
    trg_mask = jnp.broadcast_to(
        jnp.tril(jnp.ones((S_TRG, S_TRG), jnp.float32))[None], (B, S_TRG, S_TRG))

    fwd = jax.jit(functools.partial(
        transformer_forward, heads=HEADS, N=N_LAYERS, d_model=D_MODEL))
    out = fwd(params, src, trg, src_mask, trg_mask)
    jax.block_until_ready(out)

    assert out.shape == (B, S_TRG, TRG_VOCAB)
    assert bool(jnp.all(jnp.isfinite(out)))
    print("KERNEL_OK")
</pallas_src>

<mosaic_0001>
module attributes {stable_mosaic.version = 11 : i64} {
  func.func @_norm_matmul_kernel(%arg0: i32, %arg1: i32, %arg2: memref<16x32xf32, #tpu.memory_space<vmem>>, %arg3: memref<1x32xf32, #tpu.memory_space<vmem>>, %arg4: memref<1x32xf32, #tpu.memory_space<vmem>>, %arg5: memref<32x96xbf16, #tpu.memory_space<vmem>>, %arg6: memref<1x96xf32, #tpu.memory_space<vmem>>, %arg7: memref<16x96xf32, #tpu.memory_space<vmem>>) attributes {dimension_semantics = [#tpu.dimension_semantics<parallel>, #tpu.dimension_semantics<parallel>], iteration_bounds = array<i64: 1, 1>, scalar_prefetch = 0 : i64, scratch_operands = 0 : i64, tpu.core_type = #tpu.core_type<tc>, window_params = [{transform_indices = @transform_0, window_bounds = array<i64: 16, 32>}, {pipeline_mode = #tpu.pipeline_mode<synchronous>, transform_indices = @transform_1, window_bounds = array<i64: 1, 32>}, {pipeline_mode = #tpu.pipeline_mode<synchronous>, transform_indices = @transform_2, window_bounds = array<i64: 1, 32>}, {transform_indices = @transform_3, window_bounds = array<i64: 32, 96>}, {transform_indices = @transform_4, window_bounds = array<i64: 1, 96>}, {transform_indices = @transform_5, window_bounds = array<i64: 16, 96>}]} {
    %c0 = arith.constant 0 : index
    %c0_0 = arith.constant 0 : index
    %0 = vector.load %arg2[%c0, %c0_0] : memref<16x32xf32, #tpu.memory_space<vmem>>, vector<16x32xf32>
    %cst = arith.constant dense<0.000000e+00> : vector<16xf32>
    %1 = vector.multi_reduction <add>, %0, %cst [1] : vector<16x32xf32> to vector<16xf32>
    %2 = vector.shape_cast %1 : vector<16xf32> to vector<16x1xf32>
    %cst_1 = arith.constant 3.200000e+01 : f32
    %3 = vector.broadcast %cst_1 : f32 to vector<16x1xf32>
    %4 = arith.divf %2, %3 : vector<16x1xf32>
    %5 = vector.broadcast %4 : vector<16x1xf32> to vector<16x32xf32>
    %6 = arith.subf %0, %5 : vector<16x32xf32>
    %7 = arith.mulf %6, %6 : vector<16x32xf32>
    %cst_2 = arith.constant dense<0.000000e+00> : vector<16xf32>
    %8 = vector.multi_reduction <add>, %7, %cst_2 [1] : vector<16x32xf32> to vector<16xf32>
    %9 = vector.shape_cast %8 : vector<16xf32> to vector<16x1xf32>
    %cst_3 = arith.constant 0.0322580636 : f32
    %10 = vector.broadcast %cst_3 : f32 to vector<16x1xf32>
    %11 = arith.mulf %9, %10 : vector<16x1xf32>
    %12 = math.sqrt %11 : vector<16x1xf32>
    %cst_4 = arith.constant 9.99999997E-7 : f32
    %13 = vector.broadcast %cst_4 : f32 to vector<16x1xf32>
    %14 = arith.addf %12, %13 : vector<16x1xf32>
    %15 = tpu.reciprocal %14 {approx = true} : vector<16x1xf32> -> vector<16x1xf32>
    %c0_5 = arith.constant 0 : index
    %c0_6 = arith.constant 0 : index
    %16 = vector.load %arg3[%c0_5, %c0_6] : memref<1x32xf32, #tpu.memory_space<vmem>>, vector<1x32xf32>
    %17 = vector.broadcast %16 : vector<1x32xf32> to vector<16x32xf32>
    %18 = arith.mulf %17, %6 : vector<16x32xf32>
    %19 = vector.broadcast %15 : vector<16x1xf32> to vector<16x32xf32>
    %20 = arith.mulf %18, %19 : vector<16x32xf32>
    %c0_7 = arith.constant 0 : index
    %c0_8 = arith.constant 0 : index
    %21 = vector.load %arg4[%c0_7, %c0_8] : memref<1x32xf32, #tpu.memory_space<vmem>>, vector<1x32xf32>
    %22 = vector.broadcast %21 : vector<1x32xf32> to vector<16x32xf32>
    %23 = arith.addf %20, %22 : vector<16x32xf32>
    %24 = arith.truncf %23 : vector<16x32xf32> to vector<16x32xbf16>
    %c0_9 = arith.constant 0 : index
    %c0_10 = arith.constant 0 : index
    %25 = vector.load %arg5[%c0_9, %c0_10] : memref<32x96xbf16, #tpu.memory_space<vmem>>, vector<32x96xbf16>
    %cst_11 = arith.constant dense<0.000000e+00> : vector<16x96xf32>
    %26 = tpu.matmul %24, %25, %cst_11 {dimension_numbers = #tpu.dot_dimension_numbers<[1], [0], [0], [1], [0, 0, 1, 1], [], []>} : vector<16x32xbf16>, vector<32x96xbf16>, vector<16x96xf32> -> vector<16x96xf32>
    %c0_12 = arith.constant 0 : index
    %c0_13 = arith.constant 0 : index
    %27 = vector.load %arg6[%c0_12, %c0_13] : memref<1x96xf32, #tpu.memory_space<vmem>>, vector<1x96xf32>
    %28 = vector.broadcast %27 : vector<1x96xf32> to vector<16x96xf32>
    %29 = arith.addf %26, %28 : vector<16x96xf32>
    %c0_14 = arith.constant 0 : index
    %c0_15 = arith.constant 0 : index
    %30 = vector.load %arg7[%c0_14, %c0_15] : memref<16x96xf32, #tpu.memory_space<vmem>>, vector<16x96xf32>
    tpu.vector_store %arg7[%c0_14, %c0_15], %29 {strides = array<i32>} : memref<16x96xf32, #tpu.memory_space<vmem>>, vector<16x96xf32>,
    return
  }
  func.func @transform_0(%arg0: i32, %arg1: i32) -> (i32, i32) {
    %c0_i32 = arith.constant 0 : i32
    %c0_i32_0 = arith.constant 0 : i32
    return %arg0, %c0_i32 : i32, i32
  }
  func.func @transform_1(%arg0: i32, %arg1: i32) -> (i32, i32) {
    %c0_i32 = arith.constant 0 : i32
    %c0_i32_0 = arith.constant 0 : i32
    %c0_i32_1 = arith.constant 0 : i32
    return %c0_i32, %c0_i32_0 : i32, i32
  }
  func.func @transform_2(%arg0: i32, %arg1: i32) -> (i32, i32) {
    %c0_i32 = arith.constant 0 : i32
    %c0_i32_0 = arith.constant 0 : i32
    %c0_i32_1 = arith.constant 0 : i32
    return %c0_i32, %c0_i32_0 : i32, i32
  }
  func.func @transform_3(%arg0: i32, %arg1: i32) -> (i32, i32) {
    %c0_i32 = arith.constant 0 : i32
    %c0_i32_0 = arith.constant 0 : i32
    return %c0_i32, %arg1 : i32, i32
  }
  func.func @transform_4(%arg0: i32, %arg1: i32) -> (i32, i32) {
    %c0_i32 = arith.constant 0 : i32
    %c0_i32_0 = arith.constant 0 : i32
    return %c0_i32, %arg1 : i32, i32
  }
  func.func @transform_5(%arg0: i32, %arg1: i32) -> (i32, i32) {
    %c0_i32 = arith.constant 0 : i32
    return %arg0, %arg1 : i32, i32
  }
}

module attributes {stable_mosaic.version = 11 : i64} {
  func.func @_matmul_kernel(%arg0: i32, %arg1: i32, %arg2: i32, %arg3: memref<16x32xf32, #tpu.memory_space<vmem>>, %arg4: memref<32x32xbf16, #tpu.memory_space<vmem>>, %arg5: memref<1x32xf32, #tpu.memory_space<vmem>>, %arg6: memref<16x32xf32, #tpu.memory_space<vmem>>, %arg7: memref<16x32xf32, #tpu.memory_space<vmem>>, %arg8: memref<16x32xf32, #tpu.memory_space<vmem>>) attributes {dimension_semantics = [#tpu.dimension_semantics<parallel>, #tpu.dimension_semantics<parallel>, #tpu.dimension_semantics<arbitrary>], iteration_bounds = array<i64: 1, 1, 1>, scalar_prefetch = 0 : i64, scratch_operands = 1 : i64, tpu.core_type = #tpu.core_type<tc>, window_params = [{transform_indices = @transform_0, window_bounds = array<i64: 16, 32>}, {transform_indices = @transform_1, window_bounds = array<i64: 32, 32>}, {transform_indices = @transform_2, window_bounds = array<i64: 1, 32>}, {transform_indices = @transform_3, window_bounds = array<i64: 16, 32>}, {transform_indices = @transform_4, window_bounds = array<i64: 16, 32>}]} {
    %c0_i32 = arith.constant 0 : i32
    %0 = arith.cmpi eq, %arg2, %c0_i32 : i32
    %1 = arith.extui %0 : i1 to i32
    %c0_i32_0 = arith.constant 0 : i32
    %2 = arith.cmpi ne, %1, %c0_i32_0 : i32
    scf.if %2 {
      %cst_10 = arith.constant 0.000000e+00 : f32
      %13 = vector.broadcast %cst_10 : f32 to vector<16x32xf32>
      %c0_11 = arith.constant 0 : index
      %c0_12 = arith.constant 0 : index
      %14 = vector.load %arg8[%c0_11, %c0_12] : memref<16x32xf32, #tpu.memory_space<vmem>>, vector<16x32xf32>
      tpu.vector_store %arg8[%c0_11, %c0_12], %13 {strides = array<i32>} : memref<16x32xf32, #tpu.memory_space<vmem>>, vector<16x32xf32>,
    } else {
    }
    %c0 = arith.constant 0 : index
    %c0_1 = arith.constant 0 : index
    %3 = vector.load %arg8[%c0, %c0_1] : memref<16x32xf32, #tpu.memory_space<vmem>>, vector<16x32xf32>
    %c0_2 = arith.constant 0 : index
    %c0_3 = arith.constant 0 : index
    %4 = vector.load %arg3[%c0_2, %c0_3] : memref<16x32xf32, #tpu.memory_space<vmem>>, vector<16x32xf32>
    %5 = arith.truncf %4 : vector<16x32xf32> to vector<16x32xbf16>
    %c0_4 = arith.constant 0 : index
    %c0_5 = arith.constant 0 : index
    %6 = vector.load %arg4[%c0_4, %c0_5] : memref<32x32xbf16, #tpu.memory_space<vmem>>, vector<32x32xbf16>
    %cst = arith.constant dense<0.000000e+00> : vector<16x32xf32>
    %7 = tpu.matmul %5, %6, %cst {dimension_numbers = #tpu.dot_dimension_numbers<[1], [0], [0], [1], [0, 0, 1, 1], [], []>} : vector<16x32xbf16>, vector<32x32xbf16>, vector<16x32xf32> -> vector<16x32xf32>
    %8 = arith.addf %3, %7 : vector<16x32xf32>
    %c0_6 = arith.constant 0 : index
    %c0_7 = arith.constant 0 : index
    %9 = vector.load %arg8[%c0_6, %c0_7] : memref<16x32xf32, #tpu.memory_space<vmem>>, vector<16x32xf32>
    tpu.vector_store %arg8[%c0_6, %c0_7], %8 {strides = array<i32>} : memref<16x32xf32, #tpu.memory_space<vmem>>, vector<16x32xf32>,
    %c0_i32_8 = arith.constant 0 : i32
    %10 = arith.cmpi eq, %arg2, %c0_i32_8 : i32
    %11 = arith.extui %10 : i1 to i32
    %c0_i32_9 = arith.constant 0 : i32
    %12 = arith.cmpi ne, %11, %c0_i32_9 : i32
    scf.if %12 {
      %c0_10 = arith.constant 0 : index
      %c0_11 = arith.constant 0 : index
      %13 = vector.load %arg8[%c0_10, %c0_11] : memref<16x32xf32, #tpu.memory_space<vmem>>, vector<16x32xf32>
      %c0_12 = arith.constant 0 : index
      %c0_13 = arith.constant 0 : index
      %14 = vector.load %arg5[%c0_12, %c0_13] : memref<1x32xf32, #tpu.memory_space<vmem>>, vector<1x32xf32>
      %15 = vector.broadcast %14 : vector<1x32xf32> to vector<16x32xf32>
      %16 = arith.addf %13, %15 : vector<16x32xf32>
      %c0_14 = arith.constant 0 : index
      %c0_15 = arith.constant 0 : index
      %17 = vector.load %arg6[%c0_14, %c0_15] : memref<16x32xf32, #tpu.memory_space<vmem>>, vector<16x32xf32>
      %18 = arith.addf %16, %17 : vector<16x32xf32>
      %c0_16 = arith.constant 0 : index
      %c0_17 = arith.constant 0 : index
      %19 = vector.load %arg7[%c0_16, %c0_17] : memref<16x32xf32, #tpu.memory_space<vmem>>, vector<16x32xf32>
      tpu.vector_store %arg7[%c0_16, %c0_17], %18 {strides = array<i32>} : memref<16x32xf32, #tpu.memory_space<vmem>>, vector<16x32xf32>,
    } else {
    }
    return
  }
  func.func @transform_0(%arg0: i32, %arg1: i32, %arg2: i32) -> (i32, i32) {
    %c0_i32 = arith.constant 0 : i32
    return %arg0, %arg2 : i32, i32
  }
  func.func @transform_1(%arg0: i32, %arg1: i32, %arg2: i32) -> (i32, i32) {
    %c0_i32 = arith.constant 0 : i32
    return %arg2, %arg1 : i32, i32
  }
  func.func @transform_2(%arg0: i32, %arg1: i32, %arg2: i32) -> (i32, i32) {
    %c0_i32 = arith.constant 0 : i32
    %c0_i32_0 = arith.constant 0 : i32
    return %c0_i32, %arg1 : i32, i32
  }
  func.func @transform_3(%arg0: i32, %arg1: i32, %arg2: i32) -> (i32, i32) {
    %c0_i32 = arith.constant 0 : i32
    return %arg0, %arg1 : i32, i32
  }
  func.func @transform_4(%arg0: i32, %arg1: i32, %arg2: i32) -> (i32, i32) {
    %c0_i32 = arith.constant 0 : i32
    return %arg0, %arg1 : i32, i32
  }
}

module attributes {stable_mosaic.version = 11 : i64} {
  func.func @_attn_kernel(%arg0: i32, %arg1: memref<1x4x8x8xf32, #tpu.memory_space<vmem>>, %arg2: memref<1x4x8x8xf32, #tpu.memory_space<vmem>>, %arg3: memref<1x4x8x8xf32, #tpu.memory_space<vmem>>, %arg4: memref<1x1x8xf32, #tpu.memory_space<vmem>>, %arg5: memref<1x4x8x8xf32, #tpu.memory_space<vmem>>) attributes {dimension_semantics = [#tpu.dimension_semantics<parallel>], iteration_bounds = array<i64: 2>, scalar_prefetch = 0 : i64, scratch_operands = 0 : i64, tpu.core_type = #tpu.core_type<tc>, window_params = [{transform_indices = @transform_0, window_bounds = array<i64: 1, 4, 8, 8>}, {transform_indices = @transform_1, window_bounds = array<i64: 1, 4, 8, 8>}, {transform_indices = @transform_2, window_bounds = array<i64: 1, 4, 8, 8>}, {transform_indices = @transform_3, window_bounds = array<i64: 1, 1, 8>}, {transform_indices = @transform_4, window_bounds = array<i64: 1, 4, 8, 8>}]} {
    %c0 = arith.constant 0 : index
    %c0_0 = arith.constant 0 : index
    %c0_1 = arith.constant 0 : index
    %c0_2 = arith.constant 0 : index
    %0 = vector.load %arg1[%c0, %c0_0, %c0_1, %c0_2] : memref<1x4x8x8xf32, #tpu.memory_space<vmem>>, vector<1x4x8x8xf32>
    %1 = vector.shape_cast %0 : vector<1x4x8x8xf32> to vector<4x8x8xf32>
    %2 = arith.truncf %1 : vector<4x8x8xf32> to vector<4x8x8xbf16>
    %c0_3 = arith.constant 0 : index
    %c0_4 = arith.constant 0 : index
    %c0_5 = arith.constant 0 : index
    %c0_6 = arith.constant 0 : index
    %3 = vector.load %arg2[%c0_3, %c0_4, %c0_5, %c0_6] : memref<1x4x8x8xf32, #tpu.memory_space<vmem>>, vector<1x4x8x8xf32>
    %4 = vector.shape_cast %3 : vector<1x4x8x8xf32> to vector<4x8x8xf32>
    %5 = arith.truncf %4 : vector<4x8x8xf32> to vector<4x8x8xbf16>
    %c0_7 = arith.constant 0 : index
    %c0_8 = arith.constant 0 : index
    %c0_9 = arith.constant 0 : index
    %c0_10 = arith.constant 0 : index
    %6 = vector.load %arg3[%c0_7, %c0_8, %c0_9, %c0_10] : memref<1x4x8x8xf32, #tpu.memory_space<vmem>>, vector<1x4x8x8xf32>
    %7 = vector.shape_cast %6 : vector<1x4x8x8xf32> to vector<4x8x8xf32>
    %8 = arith.truncf %7 : vector<4x8x8xf32> to vector<4x8x8xbf16>
    %c0_11 = arith.constant 0 : index
    %c0_12 = arith.constant 0 : index
    %c0_13 = arith.constant 0 : index
    %9 = vector.load %arg4[%c0_11, %c0_12, %c0_13] : memref<1x1x8xf32, #tpu.memory_space<vmem>>, vector<1x1x8xf32>
    %10 = vector.shape_cast %9 : vector<1x1x8xf32> to vector<1x8xf32>
    "tpu.trace_start"() <{level = 10 : i32, message = "hqd,hkd->hqk"}> : () -> ()
    %cst = arith.constant dense<0.000000e+00> : vector<4x8x8xf32>
    %11 = tpu.matmul %2, %5, %cst {dimension_numbers = #tpu.dot_dimension_numbers<[2], [2], [1], [1], [0, 0, 0, 1, 1, 1], [0], [0]>} : vector<4x8x8xbf16>, vector<4x8x8xbf16>, vector<4x8x8xf32> -> vector<4x8x8xf32>
    "tpu.trace_stop"() : () -> ()
    %cst_14 = arith.constant 0.353553385 : f32
    %12 = vector.broadcast %cst_14 : f32 to vector<4x8x8xf32>
    %13 = arith.mulf %11, %12 : vector<4x8x8xf32>
    %14 = vector.shape_cast %10 : vector<1x8xf32> to vector<1x1x8xf32>
    %15 = vector.shape_cast %14 : vector<1x1x8xf32> to vector<1x1x8xf32>
    %16 = vector.broadcast %15 : vector<1x1x8xf32> to vector<4x8x8xf32>
    %cst_15 = arith.constant 0.000000e+00 : f32
    %17 = vector.broadcast %cst_15 : f32 to vector<4x8x8xf32>
    %18 = arith.cmpf oeq, %16, %17 : vector<4x8x8xf32>
    %cst_16 = arith.constant -1.000000e+09 : f32
    %19 = vector.broadcast %cst_16 : f32 to vector<4x8x8xf32>
    %20 = arith.select %18, %19, %13 : vector<4x8x8xi1>, vector<4x8x8xf32>
    %cst_17 = arith.constant dense<0xFF800000> : vector<4x8xf32>
    %21 = vector.multi_reduction <maximumf>, %20, %cst_17 [2] : vector<4x8x8xf32> to vector<4x8xf32>
    %22 = vector.shape_cast %21 : vector<4x8xf32> to vector<4x8x1xf32>
    %23 = vector.broadcast %22 : vector<4x8x1xf32> to vector<4x8x8xf32>
    %24 = arith.subf %20, %23 : vector<4x8x8xf32>
    %25 = math.exp %24 : vector<4x8x8xf32>
    %cst_18 = arith.constant dense<0.000000e+00> : vector<4x8xf32>
    %26 = vector.multi_reduction <add>, %25, %cst_18 [2] : vector<4x8x8xf32> to vector<4x8xf32>
    %27 = vector.shape_cast %26 : vector<4x8xf32> to vector<4x8x1xf32>
    %28 = tpu.reciprocal %27 {approx = true} : vector<4x8x1xf32> -> vector<4x8x1xf32>
    %29 = vector.broadcast %28 : vector<4x8x1xf32> to vector<4x8x8xf32>
    %30 = arith.mulf %25, %29 : vector<4x8x8xf32>
    %31 = arith.truncf %30 : vector<4x8x8xf32> to vector<4x8x8xbf16>
    "tpu.trace_start"() <{level = 10 : i32, message = "hqk,hkd->hqd"}> : () -> ()
    %cst_19 = arith.constant dense<0.000000e+00> : vector<4x8x8xf32>
    %32 = tpu.matmul %31, %8, %cst_19 {dimension_numbers = #tpu.dot_dimension_numbers<[2], [1], [1], [2], [0, 0, 0, 1, 1, 2], [0], [0]>} : vector<4x8x8xbf16>, vector<4x8x8xbf16>, vector<4x8x8xf32> -> vector<4x8x8xf32>
    "tpu.trace_stop"() : () -> ()
    %c0_20 = arith.constant 0 : index
    %c0_21 = arith.constant 0 : index
    %c0_22 = arith.constant 0 : index
    %c0_23 = arith.constant 0 : index
    %33 = vector.load %arg5[%c0_20, %c0_21, %c0_22, %c0_23] : memref<1x4x8x8xf32, #tpu.memory_space<vmem>>, vector<1x4x8x8xf32>
    %34 = vector.shape_cast %33 : vector<1x4x8x8xf32> to vector<4x8x8xf32>
    %35 = vector.shape_cast %32 : vector<4x8x8xf32> to vector<1x4x8x8xf32>
    tpu.vector_store %arg5[%c0_20, %c0_21, %c0_22, %c0_23], %35 {strides = array<i32>} : memref<1x4x8x8xf32, #tpu.memory_space<vmem>>, vector<1x4x8x8xf32>,
    return
  }
  func.func @transform_0(%arg0: i32) -> (i32, i32, i32, i32) {
    %c0_i32 = arith.constant 0 : i32
    %c0_i32_0 = arith.constant 0 : i32
    %c0_i32_1 = arith.constant 0 : i32
    %c0_i32_2 = arith.constant 0 : i32
    return %arg0, %c0_i32, %c0_i32_0, %c0_i32_1 : i32, i32, i32, i32
  }
  func.func @transform_1(%arg0: i32) -> (i32, i32, i32, i32) {
    %c0_i32 = arith.constant 0 : i32
    %c0_i32_0 = arith.constant 0 : i32
    %c0_i32_1 = arith.constant 0 : i32
    %c0_i32_2 = arith.constant 0 : i32
    return %arg0, %c0_i32, %c0_i32_0, %c0_i32_1 : i32, i32, i32, i32
  }
  func.func @transform_2(%arg0: i32) -> (i32, i32, i32, i32) {
    %c0_i32 = arith.constant 0 : i32
    %c0_i32_0 = arith.constant 0 : i32
    %c0_i32_1 = arith.constant 0 : i32
    %c0_i32_2 = arith.constant 0 : i32
    return %arg0, %c0_i32, %c0_i32_0, %c0_i32_1 : i32, i32, i32, i32
  }
  func.func @transform_3(%arg0: i32) -> (i32, i32, i32) {
    %c0_i32 = arith.constant 0 : i32
    %c0_i32_0 = arith.constant 0 : i32
    %c0_i32_1 = arith.constant 0 : i32
    return %arg0, %c0_i32, %c0_i32_0 : i32, i32, i32
  }
  func.func @transform_4(%arg0: i32) -> (i32, i32, i32, i32) {
    %c0_i32 = arith.constant 0 : i32
    %c0_i32_0 = arith.constant 0 : i32
    %c0_i32_1 = arith.constant 0 : i32
    %c0_i32_2 = arith.constant 0 : i32
    return %arg0, %c0_i32, %c0_i32_0, %c0_i32_1 : i32, i32, i32, i32
  }
}

module attributes {stable_mosaic.version = 11 : i64} {
  func.func @_norm_ffn_kernel(%arg0: i32, %arg1: memref<16x32xf32, #tpu.memory_space<vmem>>, %arg2: memref<1x32xf32, #tpu.memory_space<vmem>>, %arg3: memref<1x32xf32, #tpu.memory_space<vmem>>, %arg4: memref<32x128xbf16, #tpu.memory_space<vmem>>, %arg5: memref<1x128xf32, #tpu.memory_space<vmem>>, %arg6: memref<128x32xbf16, #tpu.memory_space<vmem>>, %arg7: memref<1x32xf32, #tpu.memory_space<vmem>>, %arg8: memref<16x32xf32, #tpu.memory_space<vmem>>) attributes {dimension_semantics = [#tpu.dimension_semantics<parallel>], iteration_bounds = array<i64: 1>, scalar_prefetch = 0 : i64, scratch_operands = 0 : i64, tpu.core_type = #tpu.core_type<tc>, window_params = [{transform_indices = @transform_0, window_bounds = array<i64: 16, 32>}, {pipeline_mode = #tpu.pipeline_mode<synchronous>, transform_indices = @transform_1, window_bounds = array<i64: 1, 32>}, {pipeline_mode = #tpu.pipeline_mode<synchronous>, transform_indices = @transform_2, window_bounds = array<i64: 1, 32>}, {pipeline_mode = #tpu.pipeline_mode<synchronous>, transform_indices = @transform_3, window_bounds = array<i64: 32, 128>}, {pipeline_mode = #tpu.pipeline_mode<synchronous>, transform_indices = @transform_4, window_bounds = array<i64: 1, 128>}, {pipeline_mode = #tpu.pipeline_mode<synchronous>, transform_indices = @transform_5, window_bounds = array<i64: 128, 32>}, {pipeline_mode = #tpu.pipeline_mode<synchronous>, transform_indices = @transform_6, window_bounds = array<i64: 1, 32>}, {transform_indices = @transform_7, window_bounds = array<i64: 16, 32>}]} {
    %c0 = arith.constant 0 : index
    %c0_0 = arith.constant 0 : index
    %0 = vector.load %arg1[%c0, %c0_0] : memref<16x32xf32, #tpu.memory_space<vmem>>, vector<16x32xf32>
    %cst = arith.constant dense<0.000000e+00> : vector<16xf32>
    %1 = vector.multi_reduction <add>, %0, %cst [1] : vector<16x32xf32> to vector<16xf32>
    %2 = vector.shape_cast %1 : vector<16xf32> to vector<16x1xf32>
    %cst_1 = arith.constant 3.200000e+01 : f32
    %3 = vector.broadcast %cst_1 : f32 to vector<16x1xf32>
    %4 = arith.divf %2, %3 : vector<16x1xf32>
    %5 = vector.broadcast %4 : vector<16x1xf32> to vector<16x32xf32>
    %6 = arith.subf %0, %5 : vector<16x32xf32>
    %7 = arith.mulf %6, %6 : vector<16x32xf32>
    %cst_2 = arith.constant dense<0.000000e+00> : vector<16xf32>
    %8 = vector.multi_reduction <add>, %7, %cst_2 [1] : vector<16x32xf32> to vector<16xf32>
    %9 = vector.shape_cast %8 : vector<16xf32> to vector<16x1xf32>
    %cst_3 = arith.constant 0.0322580636 : f32
    %10 = vector.broadcast %cst_3 : f32 to vector<16x1xf32>
    %11 = arith.mulf %9, %10 : vector<16x1xf32>
    %12 = math.sqrt %11 : vector<16x1xf32>
    %cst_4 = arith.constant 9.99999997E-7 : f32
    %13 = vector.broadcast %cst_4 : f32 to vector<16x1xf32>
    %14 = arith.addf %12, %13 : vector<16x1xf32>
    %15 = tpu.reciprocal %14 {approx = true} : vector<16x1xf32> -> vector<16x1xf32>
    %c0_5 = arith.constant 0 : index
    %c0_6 = arith.constant 0 : index
    %16 = vector.load %arg2[%c0_5, %c0_6] : memref<1x32xf32, #tpu.memory_space<vmem>>, vector<1x32xf32>
    %17 = vector.broadcast %16 : vector<1x32xf32> to vector<16x32xf32>
    %18 = arith.mulf %17, %6 : vector<16x32xf32>
    %19 = vector.broadcast %15 : vector<16x1xf32> to vector<16x32xf32>
    %20 = arith.mulf %18, %19 : vector<16x32xf32>
    %c0_7 = arith.constant 0 : index
    %c0_8 = arith.constant 0 : index
    %21 = vector.load %arg3[%c0_7, %c0_8] : memref<1x32xf32, #tpu.memory_space<vmem>>, vector<1x32xf32>
    %22 = vector.broadcast %21 : vector<1x32xf32> to vector<16x32xf32>
    %23 = arith.addf %20, %22 : vector<16x32xf32>
    %24 = arith.truncf %23 : vector<16x32xf32> to vector<16x32xbf16>
    %c0_9 = arith.constant 0 : index
    %c0_10 = arith.constant 0 : index
    %25 = vector.load %arg4[%c0_9, %c0_10] : memref<32x128xbf16, #tpu.memory_space<vmem>>, vector<32x128xbf16>
    %cst_11 = arith.constant dense<0.000000e+00> : vector<16x128xf32>
    %26 = tpu.matmul %24, %25, %cst_11 {dimension_numbers = #tpu.dot_dimension_numbers<[1], [0], [0], [1], [0, 0, 1, 1], [], []>} : vector<16x32xbf16>, vector<32x128xbf16>, vector<16x128xf32> -> vector<16x128xf32>
    %c0_12 = arith.constant 0 : index
    %c0_13 = arith.constant 0 : index
    %27 = vector.load %arg5[%c0_12, %c0_13] : memref<1x128xf32, #tpu.memory_space<vmem>>, vector<1x128xf32>
    %28 = vector.broadcast %27 : vector<1x128xf32> to vector<16x128xf32>
    %29 = arith.addf %26, %28 : vector<16x128xf32>
    %cst_14 = arith.constant 0.000000e+00 : f32
    %30 = vector.broadcast %cst_14 : f32 to vector<16x128xf32>
    %31 = arith.maximumf %29, %30 : vector<16x128xf32>
    %32 = arith.truncf %31 : vector<16x128xf32> to vector<16x128xbf16>
    %c0_15 = arith.constant 0 : index
    %c0_16 = arith.constant 0 : index
    %33 = vector.load %arg6[%c0_15, %c0_16] : memref<128x32xbf16, #tpu.memory_space<vmem>>, vector<128x32xbf16>
    %cst_17 = arith.constant dense<0.000000e+00> : vector<16x32xf32>
    %34 = tpu.matmul %32, %33, %cst_17 {dimension_numbers = #tpu.dot_dimension_numbers<[1], [0], [0], [1], [0, 0, 1, 1], [], []>} : vector<16x128xbf16>, vector<128x32xbf16>, vector<16x32xf32> -> vector<16x32xf32>
    %c0_18 = arith.constant 0 : index
    %c0_19 = arith.constant 0 : index
    %35 = vector.load %arg7[%c0_18, %c0_19] : memref<1x32xf32, #tpu.memory_space<vmem>>, vector<1x32xf32>
    %36 = vector.broadcast %35 : vector<1x32xf32> to vector<16x32xf32>
    %37 = arith.addf %34, %36 : vector<16x32xf32>
    %38 = arith.addf %0, %37 : vector<16x32xf32>
    %c0_20 = arith.constant 0 : index
    %c0_21 = arith.constant 0 : index
    %39 = vector.load %arg8[%c0_20, %c0_21] : memref<16x32xf32, #tpu.memory_space<vmem>>, vector<16x32xf32>
    tpu.vector_store %arg8[%c0_20, %c0_21], %38 {strides = array<i32>} : memref<16x32xf32, #tpu.memory_space<vmem>>, vector<16x32xf32>,
    return
  }
  func.func @transform_0(%arg0: i32) -> (i32, i32) {
    %c0_i32 = arith.constant 0 : i32
    %c0_i32_0 = arith.constant 0 : i32
    return %arg0, %c0_i32 : i32, i32
  }
  func.func @transform_1(%arg0: i32) -> (i32, i32) {
    %c0_i32 = arith.constant 0 : i32
    %c0_i32_0 = arith.constant 0 : i32
    %c0_i32_1 = arith.constant 0 : i32
    return %c0_i32, %c0_i32_0 : i32, i32
  }
  func.func @transform_2(%arg0: i32) -> (i32, i32) {
    %c0_i32 = arith.constant 0 : i32
    %c0_i32_0 = arith.constant 0 : i32
    %c0_i32_1 = arith.constant 0 : i32
    return %c0_i32, %c0_i32_0 : i32, i32
  }
  func.func @transform_3(%arg0: i32) -> (i32, i32) {
    %c0_i32 = arith.constant 0 : i32
    %c0_i32_0 = arith.constant 0 : i32
    %c0_i32_1 = arith.constant 0 : i32
    return %c0_i32, %c0_i32_0 : i32, i32
  }
  func.func @transform_4(%arg0: i32) -> (i32, i32) {
    %c0_i32 = arith.constant 0 : i32
    %c0_i32_0 = arith.constant 0 : i32
    %c0_i32_1 = arith.constant 0 : i32
    return %c0_i32, %c0_i32_0 : i32, i32
  }
  func.func @transform_5(%arg0: i32) -> (i32, i32) {
    %c0_i32 = arith.constant 0 : i32
    %c0_i32_0 = arith.constant 0 : i32
    %c0_i32_1 = arith.constant 0 : i32
    return %c0_i32, %c0_i32_0 : i32, i32
  }
  func.func @transform_6(%arg0: i32) -> (i32, i32) {
    %c0_i32 = arith.constant 0 : i32
    %c0_i32_0 = arith.constant 0 : i32
    %c0_i32_1 = arith.constant 0 : i32
    return %c0_i32, %c0_i32_0 : i32, i32
  }
  func.func @transform_7(%arg0: i32) -> (i32, i32) {
    %c0_i32 = arith.constant 0 : i32
    %c0_i32_0 = arith.constant 0 : i32
    return %arg0, %c0_i32 : i32, i32
  }
}

module attributes {stable_mosaic.version = 11 : i64} {
  func.func @_norm_kernel(%arg0: i32, %arg1: memref<16x32xf32, #tpu.memory_space<vmem>>, %arg2: memref<1x32xf32, #tpu.memory_space<vmem>>, %arg3: memref<1x32xf32, #tpu.memory_space<vmem>>, %arg4: memref<16x32xf32, #tpu.memory_space<vmem>>) attributes {dimension_semantics = [#tpu.dimension_semantics<parallel>], iteration_bounds = array<i64: 1>, scalar_prefetch = 0 : i64, scratch_operands = 0 : i64, tpu.core_type = #tpu.core_type<tc>, window_params = [{transform_indices = @transform_0, window_bounds = array<i64: 16, 32>}, {pipeline_mode = #tpu.pipeline_mode<synchronous>, transform_indices = @transform_1, window_bounds = array<i64: 1, 32>}, {pipeline_mode = #tpu.pipeline_mode<synchronous>, transform_indices = @transform_2, window_bounds = array<i64: 1, 32>}, {transform_indices = @transform_3, window_bounds = array<i64: 16, 32>}]} {
    %c0 = arith.constant 0 : index
    %c0_0 = arith.constant 0 : index
    %0 = vector.load %arg1[%c0, %c0_0] : memref<16x32xf32, #tpu.memory_space<vmem>>, vector<16x32xf32>
    %cst = arith.constant dense<0.000000e+00> : vector<16xf32>
    %1 = vector.multi_reduction <add>, %0, %cst [1] : vector<16x32xf32> to vector<16xf32>
    %2 = vector.shape_cast %1 : vector<16xf32> to vector<16x1xf32>
    %cst_1 = arith.constant 3.200000e+01 : f32
    %3 = vector.broadcast %cst_1 : f32 to vector<16x1xf32>
    %4 = arith.divf %2, %3 : vector<16x1xf32>
    %5 = vector.broadcast %4 : vector<16x1xf32> to vector<16x32xf32>
    %6 = arith.subf %0, %5 : vector<16x32xf32>
    %7 = arith.mulf %6, %6 : vector<16x32xf32>
    %cst_2 = arith.constant dense<0.000000e+00> : vector<16xf32>
    %8 = vector.multi_reduction <add>, %7, %cst_2 [1] : vector<16x32xf32> to vector<16xf32>
    %9 = vector.shape_cast %8 : vector<16xf32> to vector<16x1xf32>
    %cst_3 = arith.constant 0.0322580636 : f32
    %10 = vector.broadcast %cst_3 : f32 to vector<16x1xf32>
    %11 = arith.mulf %9, %10 : vector<16x1xf32>
    %12 = math.sqrt %11 : vector<16x1xf32>
    %cst_4 = arith.constant 9.99999997E-7 : f32
    %13 = vector.broadcast %cst_4 : f32 to vector<16x1xf32>
    %14 = arith.addf %12, %13 : vector<16x1xf32>
    %15 = tpu.reciprocal %14 {approx = true} : vector<16x1xf32> -> vector<16x1xf32>
    %c0_5 = arith.constant 0 : index
    %c0_6 = arith.constant 0 : index
    %16 = vector.load %arg2[%c0_5, %c0_6] : memref<1x32xf32, #tpu.memory_space<vmem>>, vector<1x32xf32>
    %17 = vector.broadcast %16 : vector<1x32xf32> to vector<16x32xf32>
    %18 = arith.mulf %17, %6 : vector<16x32xf32>
    %19 = vector.broadcast %15 : vector<16x1xf32> to vector<16x32xf32>
    %20 = arith.mulf %18, %19 : vector<16x32xf32>
    %c0_7 = arith.constant 0 : index
    %c0_8 = arith.constant 0 : index
    %21 = vector.load %arg3[%c0_7, %c0_8] : memref<1x32xf32, #tpu.memory_space<vmem>>, vector<1x32xf32>
    %22 = vector.broadcast %21 : vector<1x32xf32> to vector<16x32xf32>
    %23 = arith.addf %20, %22 : vector<16x32xf32>
    %c0_9 = arith.constant 0 : index
    %c0_10 = arith.constant 0 : index
    %24 = vector.load %arg4[%c0_9, %c0_10] : memref<16x32xf32, #tpu.memory_space<vmem>>, vector<16x32xf32>
    tpu.vector_store %arg4[%c0_9, %c0_10], %23 {strides = array<i32>} : memref<16x32xf32, #tpu.memory_space<vmem>>, vector<16x32xf32>,
    return
  }
  func.func @transform_0(%arg0: i32) -> (i32, i32) {
    %c0_i32 = arith.constant 0 : i32
    %c0_i32_0 = arith.constant 0 : i32
    return %arg0, %c0_i32 : i32, i32
  }
  func.func @transform_1(%arg0: i32) -> (i32, i32) {
    %c0_i32 = arith.constant 0 : i32
    %c0_i32_0 = arith.constant 0 : i32
    %c0_i32_1 = arith.constant 0 : i32
    return %c0_i32, %c0_i32_0 : i32, i32
  }
  func.func @transform_2(%arg0: i32) -> (i32, i32) {
    %c0_i32 = arith.constant 0 : i32
    %c0_i32_0 = arith.constant 0 : i32
    %c0_i32_1 = arith.constant 0 : i32
    return %c0_i32, %c0_i32_0 : i32, i32
  }
  func.func @transform_3(%arg0: i32) -> (i32, i32) {
    %c0_i32 = arith.constant 0 : i32
    %c0_i32_0 = arith.constant 0 : i32
    return %arg0, %c0_i32 : i32, i32
  }
}

module attributes {stable_mosaic.version = 11 : i64} {
  func.func @_matmul_kernel(%arg0: i32, %arg1: i32, %arg2: i32, %arg3: memref<16x32xf32, #tpu.memory_space<vmem>>, %arg4: memref<32x64xbf16, #tpu.memory_space<vmem>>, %arg5: memref<1x64xf32, #tpu.memory_space<vmem>>, %arg6: memref<16x64xf32, #tpu.memory_space<vmem>>, %arg7: memref<16x64xf32, #tpu.memory_space<vmem>>) attributes {dimension_semantics = [#tpu.dimension_semantics<parallel>, #tpu.dimension_semantics<parallel>, #tpu.dimension_semantics<arbitrary>], iteration_bounds = array<i64: 1, 1, 1>, scalar_prefetch = 0 : i64, scratch_operands = 1 : i64, tpu.core_type = #tpu.core_type<tc>, window_params = [{transform_indices = @transform_0, window_bounds = array<i64: 16, 32>}, {transform_indices = @transform_1, window_bounds = array<i64: 32, 64>}, {transform_indices = @transform_2, window_bounds = array<i64: 1, 64>}, {transform_indices = @transform_3, window_bounds = array<i64: 16, 64>}]} {
    %c0_i32 = arith.constant 0 : i32
    %0 = arith.cmpi eq, %arg2, %c0_i32 : i32
    %1 = arith.extui %0 : i1 to i32
    %c0_i32_0 = arith.constant 0 : i32
    %2 = arith.cmpi ne, %1, %c0_i32_0 : i32
    scf.if %2 {
      %cst_10 = arith.constant 0.000000e+00 : f32
      %13 = vector.broadcast %cst_10 : f32 to vector<16x64xf32>
      %c0_11 = arith.constant 0 : index
      %c0_12 = arith.constant 0 : index
      %14 = vector.load %arg7[%c0_11, %c0_12] : memref<16x64xf32, #tpu.memory_space<vmem>>, vector<16x64xf32>
      tpu.vector_store %arg7[%c0_11, %c0_12], %13 {strides = array<i32>} : memref<16x64xf32, #tpu.memory_space<vmem>>, vector<16x64xf32>,
    } else {
    }
    %c0 = arith.constant 0 : index
    %c0_1 = arith.constant 0 : index
    %3 = vector.load %arg7[%c0, %c0_1] : memref<16x64xf32, #tpu.memory_space<vmem>>, vector<16x64xf32>
    %c0_2 = arith.constant 0 : index
    %c0_3 = arith.constant 0 : index
    %4 = vector.load %arg3[%c0_2, %c0_3] : memref<16x32xf32, #tpu.memory_space<vmem>>, vector<16x32xf32>
    %5 = arith.truncf %4 : vector<16x32xf32> to vector<16x32xbf16>
    %c0_4 = arith.constant 0 : index
    %c0_5 = arith.constant 0 : index
    %6 = vector.load %arg4[%c0_4, %c0_5] : memref<32x64xbf16, #tpu.memory_space<vmem>>, vector<32x64xbf16>
    %cst = arith.constant dense<0.000000e+00> : vector<16x64xf32>
    %7 = tpu.matmul %5, %6, %cst {dimension_numbers = #tpu.dot_dimension_numbers<[1], [0], [0], [1], [0, 0, 1, 1], [], []>} : vector<16x32xbf16>, vector<32x64xbf16>, vector<16x64xf32> -> vector<16x64xf32>
    %8 = arith.addf %3, %7 : vector<16x64xf32>
    %c0_6 = arith.constant 0 : index
    %c0_7 = arith.constant 0 : index
    %9 = vector.load %arg7[%c0_6, %c0_7] : memref<16x64xf32, #tpu.memory_space<vmem>>, vector<16x64xf32>
    tpu.vector_store %arg7[%c0_6, %c0_7], %8 {strides = array<i32>} : memref<16x64xf32, #tpu.memory_space<vmem>>, vector<16x64xf32>,
    %c0_i32_8 = arith.constant 0 : i32
    %10 = arith.cmpi eq, %arg2, %c0_i32_8 : i32
    %11 = arith.extui %10 : i1 to i32
    %c0_i32_9 = arith.constant 0 : i32
    %12 = arith.cmpi ne, %11, %c0_i32_9 : i32
    scf.if %12 {
      %c0_10 = arith.constant 0 : index
      %c0_11 = arith.constant 0 : index
      %13 = vector.load %arg7[%c0_10, %c0_11] : memref<16x64xf32, #tpu.memory_space<vmem>>, vector<16x64xf32>
      %c0_12 = arith.constant 0 : index
      %c0_13 = arith.constant 0 : index
      %14 = vector.load %arg5[%c0_12, %c0_13] : memref<1x64xf32, #tpu.memory_space<vmem>>, vector<1x64xf32>
      %15 = vector.broadcast %14 : vector<1x64xf32> to vector<16x64xf32>
      %16 = arith.addf %13, %15 : vector<16x64xf32>
      %c0_14 = arith.constant 0 : index
      %c0_15 = arith.constant 0 : index
      %17 = vector.load %arg6[%c0_14, %c0_15] : memref<16x64xf32, #tpu.memory_space<vmem>>, vector<16x64xf32>
      tpu.vector_store %arg6[%c0_14, %c0_15], %16 {strides = array<i32>} : memref<16x64xf32, #tpu.memory_space<vmem>>, vector<16x64xf32>,
    } else {
    }
    return
  }
  func.func @transform_0(%arg0: i32, %arg1: i32, %arg2: i32) -> (i32, i32) {
    %c0_i32 = arith.constant 0 : i32
    return %arg0, %arg2 : i32, i32
  }
  func.func @transform_1(%arg0: i32, %arg1: i32, %arg2: i32) -> (i32, i32) {
    %c0_i32 = arith.constant 0 : i32
    return %arg2, %arg1 : i32, i32
  }
  func.func @transform_2(%arg0: i32, %arg1: i32, %arg2: i32) -> (i32, i32) {
    %c0_i32 = arith.constant 0 : i32
    %c0_i32_0 = arith.constant 0 : i32
    return %c0_i32, %arg1 : i32, i32
  }
  func.func @transform_3(%arg0: i32, %arg1: i32, %arg2: i32) -> (i32, i32) {
    %c0_i32 = arith.constant 0 : i32
    return %arg0, %arg1 : i32, i32
  }
}

module attributes {stable_mosaic.version = 11 : i64} {
  func.func @_norm_matmul_kernel(%arg0: i32, %arg1: i32, %arg2: memref<16x32xf32, #tpu.memory_space<vmem>>, %arg3: memref<1x32xf32, #tpu.memory_space<vmem>>, %arg4: memref<1x32xf32, #tpu.memory_space<vmem>>, %arg5: memref<32x32xbf16, #tpu.memory_space<vmem>>, %arg6: memref<1x32xf32, #tpu.memory_space<vmem>>, %arg7: memref<16x32xf32, #tpu.memory_space<vmem>>) attributes {dimension_semantics = [#tpu.dimension_semantics<parallel>, #tpu.dimension_semantics<parallel>], iteration_bounds = array<i64: 1, 1>, scalar_prefetch = 0 : i64, scratch_operands = 0 : i64, tpu.core_type = #tpu.core_type<tc>, window_params = [{transform_indices = @transform_0, window_bounds = array<i64: 16, 32>}, {pipeline_mode = #tpu.pipeline_mode<synchronous>, transform_indices = @transform_1, window_bounds = array<i64: 1, 32>}, {pipeline_mode = #tpu.pipeline_mode<synchronous>, transform_indices = @transform_2, window_bounds = array<i64: 1, 32>}, {transform_indices = @transform_3, window_bounds = array<i64: 32, 32>}, {transform_indices = @transform_4, window_bounds = array<i64: 1, 32>}, {transform_indices = @transform_5, window_bounds = array<i64: 16, 32>}]} {
    %c0 = arith.constant 0 : index
    %c0_0 = arith.constant 0 : index
    %0 = vector.load %arg2[%c0, %c0_0] : memref<16x32xf32, #tpu.memory_space<vmem>>, vector<16x32xf32>
    %cst = arith.constant dense<0.000000e+00> : vector<16xf32>
    %1 = vector.multi_reduction <add>, %0, %cst [1] : vector<16x32xf32> to vector<16xf32>
    %2 = vector.shape_cast %1 : vector<16xf32> to vector<16x1xf32>
    %cst_1 = arith.constant 3.200000e+01 : f32
    %3 = vector.broadcast %cst_1 : f32 to vector<16x1xf32>
    %4 = arith.divf %2, %3 : vector<16x1xf32>
    %5 = vector.broadcast %4 : vector<16x1xf32> to vector<16x32xf32>
    %6 = arith.subf %0, %5 : vector<16x32xf32>
    %7 = arith.mulf %6, %6 : vector<16x32xf32>
    %cst_2 = arith.constant dense<0.000000e+00> : vector<16xf32>
    %8 = vector.multi_reduction <add>, %7, %cst_2 [1] : vector<16x32xf32> to vector<16xf32>
    %9 = vector.shape_cast %8 : vector<16xf32> to vector<16x1xf32>
    %cst_3 = arith.constant 0.0322580636 : f32
    %10 = vector.broadcast %cst_3 : f32 to vector<16x1xf32>
    %11 = arith.mulf %9, %10 : vector<16x1xf32>
    %12 = math.sqrt %11 : vector<16x1xf32>
    %cst_4 = arith.constant 9.99999997E-7 : f32
    %13 = vector.broadcast %cst_4 : f32 to vector<16x1xf32>
    %14 = arith.addf %12, %13 : vector<16x1xf32>
    %15 = tpu.reciprocal %14 {approx = true} : vector<16x1xf32> -> vector<16x1xf32>
    %c0_5 = arith.constant 0 : index
    %c0_6 = arith.constant 0 : index
    %16 = vector.load %arg3[%c0_5, %c0_6] : memref<1x32xf32, #tpu.memory_space<vmem>>, vector<1x32xf32>
    %17 = vector.broadcast %16 : vector<1x32xf32> to vector<16x32xf32>
    %18 = arith.mulf %17, %6 : vector<16x32xf32>
    %19 = vector.broadcast %15 : vector<16x1xf32> to vector<16x32xf32>
    %20 = arith.mulf %18, %19 : vector<16x32xf32>
    %c0_7 = arith.constant 0 : index
    %c0_8 = arith.constant 0 : index
    %21 = vector.load %arg4[%c0_7, %c0_8] : memref<1x32xf32, #tpu.memory_space<vmem>>, vector<1x32xf32>
    %22 = vector.broadcast %21 : vector<1x32xf32> to vector<16x32xf32>
    %23 = arith.addf %20, %22 : vector<16x32xf32>
    %24 = arith.truncf %23 : vector<16x32xf32> to vector<16x32xbf16>
    %c0_9 = arith.constant 0 : index
    %c0_10 = arith.constant 0 : index
    %25 = vector.load %arg5[%c0_9, %c0_10] : memref<32x32xbf16, #tpu.memory_space<vmem>>, vector<32x32xbf16>
    %cst_11 = arith.constant dense<0.000000e+00> : vector<16x32xf32>
    %26 = tpu.matmul %24, %25, %cst_11 {dimension_numbers = #tpu.dot_dimension_numbers<[1], [0], [0], [1], [0, 0, 1, 1], [], []>} : vector<16x32xbf16>, vector<32x32xbf16>, vector<16x32xf32> -> vector<16x32xf32>
    %c0_12 = arith.constant 0 : index
    %c0_13 = arith.constant 0 : index
    %27 = vector.load %arg6[%c0_12, %c0_13] : memref<1x32xf32, #tpu.memory_space<vmem>>, vector<1x32xf32>
    %28 = vector.broadcast %27 : vector<1x32xf32> to vector<16x32xf32>
    %29 = arith.addf %26, %28 : vector<16x32xf32>
    %c0_14 = arith.constant 0 : index
    %c0_15 = arith.constant 0 : index
    %30 = vector.load %arg7[%c0_14, %c0_15] : memref<16x32xf32, #tpu.memory_space<vmem>>, vector<16x32xf32>
    tpu.vector_store %arg7[%c0_14, %c0_15], %29 {strides = array<i32>} : memref<16x32xf32, #tpu.memory_space<vmem>>, vector<16x32xf32>,
    return
  }
  func.func @transform_0(%arg0: i32, %arg1: i32) -> (i32, i32) {
    %c0_i32 = arith.constant 0 : i32
    %c0_i32_0 = arith.constant 0 : i32
    return %arg0, %c0_i32 : i32, i32
  }
  func.func @transform_1(%arg0: i32, %arg1: i32) -> (i32, i32) {
    %c0_i32 = arith.constant 0 : i32
    %c0_i32_0 = arith.constant 0 : i32
    %c0_i32_1 = arith.constant 0 : i32
    return %c0_i32, %c0_i32_0 : i32, i32
  }
  func.func @transform_2(%arg0: i32, %arg1: i32) -> (i32, i32) {
    %c0_i32 = arith.constant 0 : i32
    %c0_i32_0 = arith.constant 0 : i32
    %c0_i32_1 = arith.constant 0 : i32
    return %c0_i32, %c0_i32_0 : i32, i32
  }
  func.func @transform_3(%arg0: i32, %arg1: i32) -> (i32, i32) {
    %c0_i32 = arith.constant 0 : i32
    %c0_i32_0 = arith.constant 0 : i32
    return %c0_i32, %arg1 : i32, i32
  }
  func.func @transform_4(%arg0: i32, %arg1: i32) -> (i32, i32) {
    %c0_i32 = arith.constant 0 : i32
    %c0_i32_0 = arith.constant 0 : i32
    return %c0_i32, %arg1 : i32, i32
  }
  func.func @transform_5(%arg0: i32, %arg1: i32) -> (i32, i32) {
    %c0_i32 = arith.constant 0 : i32
    return %arg0, %arg1 : i32, i32
  }
}

module attributes {stable_mosaic.version = 11 : i64} {
  func.func @_attn_kernel(%arg0: i32, %arg1: memref<1x4x8x8xf32, #tpu.memory_space<vmem>>, %arg2: memref<1x4x8x8xf32, #tpu.memory_space<vmem>>, %arg3: memref<1x4x8x8xf32, #tpu.memory_space<vmem>>, %arg4: memref<1x8x8xf32, #tpu.memory_space<vmem>>, %arg5: memref<1x4x8x8xf32, #tpu.memory_space<vmem>>) attributes {dimension_semantics = [#tpu.dimension_semantics<parallel>], iteration_bounds = array<i64: 2>, scalar_prefetch = 0 : i64, scratch_operands = 0 : i64, tpu.core_type = #tpu.core_type<tc>, window_params = [{transform_indices = @transform_0, window_bounds = array<i64: 1, 4, 8, 8>}, {transform_indices = @transform_1, window_bounds = array<i64: 1, 4, 8, 8>}, {transform_indices = @transform_2, window_bounds = array<i64: 1, 4, 8, 8>}, {transform_indices = @transform_3, window_bounds = array<i64: 1, 8, 8>}, {transform_indices = @transform_4, window_bounds = array<i64: 1, 4, 8, 8>}]} {
    %c0 = arith.constant 0 : index
    %c0_0 = arith.constant 0 : index
    %c0_1 = arith.constant 0 : index
    %c0_2 = arith.constant 0 : index
    %0 = vector.load %arg1[%c0, %c0_0, %c0_1, %c0_2] : memref<1x4x8x8xf32, #tpu.memory_space<vmem>>, vector<1x4x8x8xf32>
    %1 = vector.shape_cast %0 : vector<1x4x8x8xf32> to vector<4x8x8xf32>
    %2 = arith.truncf %1 : vector<4x8x8xf32> to vector<4x8x8xbf16>
    %c0_3 = arith.constant 0 : index
    %c0_4 = arith.constant 0 : index
    %c0_5 = arith.constant 0 : index
    %c0_6 = arith.constant 0 : index
    %3 = vector.load %arg2[%c0_3, %c0_4, %c0_5, %c0_6] : memref<1x4x8x8xf32, #tpu.memory_space<vmem>>, vector<1x4x8x8xf32>
    %4 = vector.shape_cast %3 : vector<1x4x8x8xf32> to vector<4x8x8xf32>
    %5 = arith.truncf %4 : vector<4x8x8xf32> to vector<4x8x8xbf16>
    %c0_7 = arith.constant 0 : index
    %c0_8 = arith.constant 0 : index
    %c0_9 = arith.constant 0 : index
    %c0_10 = arith.constant 0 : index
    %6 = vector.load %arg3[%c0_7, %c0_8, %c0_9, %c0_10] : memref<1x4x8x8xf32, #tpu.memory_space<vmem>>, vector<1x4x8x8xf32>
    %7 = vector.shape_cast %6 : vector<1x4x8x8xf32> to vector<4x8x8xf32>
    %8 = arith.truncf %7 : vector<4x8x8xf32> to vector<4x8x8xbf16>
    %c0_11 = arith.constant 0 : index
    %c0_12 = arith.constant 0 : index
    %c0_13 = arith.constant 0 : index
    %9 = vector.load %arg4[%c0_11, %c0_12, %c0_13] : memref<1x8x8xf32, #tpu.memory_space<vmem>>, vector<1x8x8xf32>
    %10 = vector.shape_cast %9 : vector<1x8x8xf32> to vector<8x8xf32>
    "tpu.trace_start"() <{level = 10 : i32, message = "hqd,hkd->hqk"}> : () -> ()
    %cst = arith.constant dense<0.000000e+00> : vector<4x8x8xf32>
    %11 = tpu.matmul %2, %5, %cst {dimension_numbers = #tpu.dot_dimension_numbers<[2], [2], [1], [1], [0, 0, 0, 1, 1, 1], [0], [0]>} : vector<4x8x8xbf16>, vector<4x8x8xbf16>, vector<4x8x8xf32> -> vector<4x8x8xf32>
    "tpu.trace_stop"() : () -> ()
    %cst_14 = arith.constant 0.353553385 : f32
    %12 = vector.broadcast %cst_14 : f32 to vector<4x8x8xf32>
    %13 = arith.mulf %11, %12 : vector<4x8x8xf32>
    %14 = vector.shape_cast %10 : vector<8x8xf32> to vector<1x8x8xf32>
    %15 = vector.shape_cast %14 : vector<1x8x8xf32> to vector<1x8x8xf32>
    %16 = vector.broadcast %15 : vector<1x8x8xf32> to vector<4x8x8xf32>
    %cst_15 = arith.constant 0.000000e+00 : f32
    %17 = vector.broadcast %cst_15 : f32 to vector<4x8x8xf32>
    %18 = arith.cmpf oeq, %16, %17 : vector<4x8x8xf32>
    %cst_16 = arith.constant -1.000000e+09 : f32
    %19 = vector.broadcast %cst_16 : f32 to vector<4x8x8xf32>
    %20 = arith.select %18, %19, %13 : vector<4x8x8xi1>, vector<4x8x8xf32>
    %cst_17 = arith.constant dense<0xFF800000> : vector<4x8xf32>
    %21 = vector.multi_reduction <maximumf>, %20, %cst_17 [2] : vector<4x8x8xf32> to vector<4x8xf32>
    %22 = vector.shape_cast %21 : vector<4x8xf32> to vector<4x8x1xf32>
    %23 = vector.broadcast %22 : vector<4x8x1xf32> to vector<4x8x8xf32>
    %24 = arith.subf %20, %23 : vector<4x8x8xf32>
    %25 = math.exp %24 : vector<4x8x8xf32>
    %cst_18 = arith.constant dense<0.000000e+00> : vector<4x8xf32>
    %26 = vector.multi_reduction <add>, %25, %cst_18 [2] : vector<4x8x8xf32> to vector<4x8xf32>
    %27 = vector.shape_cast %26 : vector<4x8xf32> to vector<4x8x1xf32>
    %28 = tpu.reciprocal %27 {approx = true} : vector<4x8x1xf32> -> vector<4x8x1xf32>
    %29 = vector.broadcast %28 : vector<4x8x1xf32> to vector<4x8x8xf32>
    %30 = arith.mulf %25, %29 : vector<4x8x8xf32>
    %31 = arith.truncf %30 : vector<4x8x8xf32> to vector<4x8x8xbf16>
    "tpu.trace_start"() <{level = 10 : i32, message = "hqk,hkd->hqd"}> : () -> ()
    %cst_19 = arith.constant dense<0.000000e+00> : vector<4x8x8xf32>
    %32 = tpu.matmul %31, %8, %cst_19 {dimension_numbers = #tpu.dot_dimension_numbers<[2], [1], [1], [2], [0, 0, 0, 1, 1, 2], [0], [0]>} : vector<4x8x8xbf16>, vector<4x8x8xbf16>, vector<4x8x8xf32> -> vector<4x8x8xf32>
    "tpu.trace_stop"() : () -> ()
    %c0_20 = arith.constant 0 : index
    %c0_21 = arith.constant 0 : index
    %c0_22 = arith.constant 0 : index
    %c0_23 = arith.constant 0 : index
    %33 = vector.load %arg5[%c0_20, %c0_21, %c0_22, %c0_23] : memref<1x4x8x8xf32, #tpu.memory_space<vmem>>, vector<1x4x8x8xf32>
    %34 = vector.shape_cast %33 : vector<1x4x8x8xf32> to vector<4x8x8xf32>
    %35 = vector.shape_cast %32 : vector<4x8x8xf32> to vector<1x4x8x8xf32>
    tpu.vector_store %arg5[%c0_20, %c0_21, %c0_22, %c0_23], %35 {strides = array<i32>} : memref<1x4x8x8xf32, #tpu.memory_space<vmem>>, vector<1x4x8x8xf32>,
    return
  }
  func.func @transform_0(%arg0: i32) -> (i32, i32, i32, i32) {
    %c0_i32 = arith.constant 0 : i32
    %c0_i32_0 = arith.constant 0 : i32
    %c0_i32_1 = arith.constant 0 : i32
    %c0_i32_2 = arith.constant 0 : i32
    return %arg0, %c0_i32, %c0_i32_0, %c0_i32_1 : i32, i32, i32, i32
  }
  func.func @transform_1(%arg0: i32) -> (i32, i32, i32, i32) {
    %c0_i32 = arith.constant 0 : i32
    %c0_i32_0 = arith.constant 0 : i32
    %c0_i32_1 = arith.constant 0 : i32
    %c0_i32_2 = arith.constant 0 : i32
    return %arg0, %c0_i32, %c0_i32_0, %c0_i32_1 : i32, i32, i32, i32
  }
  func.func @transform_2(%arg0: i32) -> (i32, i32, i32, i32) {
    %c0_i32 = arith.constant 0 : i32
    %c0_i32_0 = arith.constant 0 : i32
    %c0_i32_1 = arith.constant 0 : i32
    %c0_i32_2 = arith.constant 0 : i32
    return %arg0, %c0_i32, %c0_i32_0, %c0_i32_1 : i32, i32, i32, i32
  }
  func.func @transform_3(%arg0: i32) -> (i32, i32, i32) {
    %c0_i32 = arith.constant 0 : i32
    %c0_i32_0 = arith.constant 0 : i32
    %c0_i32_1 = arith.constant 0 : i32
    return %arg0, %c0_i32, %c0_i32_0 : i32, i32, i32
  }
  func.func @transform_4(%arg0: i32) -> (i32, i32, i32, i32) {
    %c0_i32 = arith.constant 0 : i32
    %c0_i32_0 = arith.constant 0 : i32
    %c0_i32_1 = arith.constant 0 : i32
    %c0_i32_2 = arith.constant 0 : i32
    return %arg0, %c0_i32, %c0_i32_0, %c0_i32_1 : i32, i32, i32, i32
  }
}

module attributes {stable_mosaic.version = 11 : i64} {
  func.func @_norm_matmul_kernel(%arg0: i32, %arg1: i32, %arg2: memref<16x32xf32, #tpu.memory_space<vmem>>, %arg3: memref<1x32xf32, #tpu.memory_space<vmem>>, %arg4: memref<1x32xf32, #tpu.memory_space<vmem>>, %arg5: memref<32x16xbf16, #tpu.memory_space<vmem>>, %arg6: memref<1x16xf32, #tpu.memory_space<vmem>>, %arg7: memref<16x16xf32, #tpu.memory_space<vmem>>) attributes {dimension_semantics = [#tpu.dimension_semantics<parallel>, #tpu.dimension_semantics<parallel>], iteration_bounds = array<i64: 1, 1>, scalar_prefetch = 0 : i64, scratch_operands = 0 : i64, tpu.core_type = #tpu.core_type<tc>, window_params = [{transform_indices = @transform_0, window_bounds = array<i64: 16, 32>}, {pipeline_mode = #tpu.pipeline_mode<synchronous>, transform_indices = @transform_1, window_bounds = array<i64: 1, 32>}, {pipeline_mode = #tpu.pipeline_mode<synchronous>, transform_indices = @transform_2, window_bounds = array<i64: 1, 32>}, {transform_indices = @transform_3, window_bounds = array<i64: 32, 16>}, {transform_indices = @transform_4, window_bounds = array<i64: 1, 16>}, {transform_indices = @transform_5, window_bounds = array<i64: 16, 16>}]} {
    %c0 = arith.constant 0 : index
    %c0_0 = arith.constant 0 : index
    %0 = vector.load %arg2[%c0, %c0_0] : memref<16x32xf32, #tpu.memory_space<vmem>>, vector<16x32xf32>
    %cst = arith.constant dense<0.000000e+00> : vector<16xf32>
    %1 = vector.multi_reduction <add>, %0, %cst [1] : vector<16x32xf32> to vector<16xf32>
    %2 = vector.shape_cast %1 : vector<16xf32> to vector<16x1xf32>
    %cst_1 = arith.constant 3.200000e+01 : f32
    %3 = vector.broadcast %cst_1 : f32 to vector<16x1xf32>
    %4 = arith.divf %2, %3 : vector<16x1xf32>
    %5 = vector.broadcast %4 : vector<16x1xf32> to vector<16x32xf32>
    %6 = arith.subf %0, %5 : vector<16x32xf32>
    %7 = arith.mulf %6, %6 : vector<16x32xf32>
    %cst_2 = arith.constant dense<0.000000e+00> : vector<16xf32>
    %8 = vector.multi_reduction <add>, %7, %cst_2 [1] : vector<16x32xf32> to vector<16xf32>
    %9 = vector.shape_cast %8 : vector<16xf32> to vector<16x1xf32>
    %cst_3 = arith.constant 0.0322580636 : f32
    %10 = vector.broadcast %cst_3 : f32 to vector<16x1xf32>
    %11 = arith.mulf %9, %10 : vector<16x1xf32>
    %12 = math.sqrt %11 : vector<16x1xf32>
    %cst_4 = arith.constant 9.99999997E-7 : f32
    %13 = vector.broadcast %cst_4 : f32 to vector<16x1xf32>
    %14 = arith.addf %12, %13 : vector<16x1xf32>
    %15 = tpu.reciprocal %14 {approx = true} : vector<16x1xf32> -> vector<16x1xf32>
    %c0_5 = arith.constant 0 : index
    %c0_6 = arith.constant 0 : index
    %16 = vector.load %arg3[%c0_5, %c0_6] : memref<1x32xf32, #tpu.memory_space<vmem>>, vector<1x32xf32>
    %17 = vector.broadcast %16 : vector<1x32xf32> to vector<16x32xf32>
    %18 = arith.mulf %17, %6 : vector<16x32xf32>
    %19 = vector.broadcast %15 : vector<16x1xf32> to vector<16x32xf32>
    %20 = arith.mulf %18, %19 : vector<16x32xf32>
    %c0_7 = arith.constant 0 : index
    %c0_8 = arith.constant 0 : index
    %21 = vector.load %arg4[%c0_7, %c0_8] : memref<1x32xf32, #tpu.memory_space<vmem>>, vector<1x32xf32>
    %22 = vector.broadcast %21 : vector<1x32xf32> to vector<16x32xf32>
    %23 = arith.addf %20, %22 : vector<16x32xf32>
    %24 = arith.truncf %23 : vector<16x32xf32> to vector<16x32xbf16>
    %c0_9 = arith.constant 0 : index
    %c0_10 = arith.constant 0 : index
    %25 = vector.load %arg5[%c0_9, %c0_10] : memref<32x16xbf16, #tpu.memory_space<vmem>>, vector<32x16xbf16>
    %cst_11 = arith.constant dense<0.000000e+00> : vector<16x16xf32>
    %26 = tpu.matmul %24, %25, %cst_11 {dimension_numbers = #tpu.dot_dimension_numbers<[1], [0], [0], [1], [0, 0, 1, 1], [], []>} : vector<16x32xbf16>, vector<32x16xbf16>, vector<16x16xf32> -> vector<16x16xf32>
    %c0_12 = arith.constant 0 : index
    %c0_13 = arith.constant 0 : index
    %27 = vector.load %arg6[%c0_12, %c0_13] : memref<1x16xf32, #tpu.memory_space<vmem>>, vector<1x16xf32>
    %28 = vector.broadcast %27 : vector<1x16xf32> to vector<16x16xf32>
    %29 = arith.addf %26, %28 : vector<16x16xf32>
    %c0_14 = arith.constant 0 : index
    %c0_15 = arith.constant 0 : index
    %30 = vector.load %arg7[%c0_14, %c0_15] : memref<16x16xf32, #tpu.memory_space<vmem>>, vector<16x16xf32>
    tpu.vector_store %arg7[%c0_14, %c0_15], %29 {strides = array<i32>} : memref<16x16xf32, #tpu.memory_space<vmem>>, vector<16x16xf32>,
    return
  }
  func.func @transform_0(%arg0: i32, %arg1: i32) -> (i32, i32) {
    %c0_i32 = arith.constant 0 : i32
    %c0_i32_0 = arith.constant 0 : i32
    return %arg0, %c0_i32 : i32, i32
  }
  func.func @transform_1(%arg0: i32, %arg1: i32) -> (i32, i32) {
    %c0_i32 = arith.constant 0 : i32
    %c0_i32_0 = arith.constant 0 : i32
    %c0_i32_1 = arith.constant 0 : i32
    return %c0_i32, %c0_i32_0 : i32, i32
  }
  func.func @transform_2(%arg0: i32, %arg1: i32) -> (i32, i32) {
    %c0_i32 = arith.constant 0 : i32
    %c0_i32_0 = arith.constant 0 : i32
    %c0_i32_1 = arith.constant 0 : i32
    return %c0_i32, %c0_i32_0 : i32, i32
  }
  func.func @transform_3(%arg0: i32, %arg1: i32) -> (i32, i32) {
    %c0_i32 = arith.constant 0 : i32
    %c0_i32_0 = arith.constant 0 : i32
    return %c0_i32, %arg1 : i32, i32
  }
  func.func @transform_4(%arg0: i32, %arg1: i32) -> (i32, i32) {
    %c0_i32 = arith.constant 0 : i32
    %c0_i32_0 = arith.constant 0 : i32
    return %c0_i32, %arg1 : i32, i32
  }
  func.func @transform_5(%arg0: i32, %arg1: i32) -> (i32, i32) {
    %c0_i32 = arith.constant 0 : i32
    return %arg0, %arg1 : i32, i32
  }
}

</mosaic_0001>

<bundles_post_ra>
// kernel: transformer_forward.27
= control target key start
LH: loop header
LB: loop body
LE: loop exit
PB: predicated region body
PF: predicated region fallthrough
CT: control target
= control target key end

     0   :  { %vm22_vm0 = vcmask 261120   ;;  %v138_v0 = vmov 0.0   ;;  %vm139_vm1 = vmmov 0   ;;  %s199_s1 = inlined_call_operand.vmem [shape: bf16[32,32], index: 1, kind: input, shape index: {}]   ;;  %s200_s0 = inlined_call_operand.vmem [shape: f32[16,32], index: 0, kind: input, shape index: {}]   ;;  %s201_s2 = inlined_call_operand.vmem [shape: f32[1,32], index: 2, kind: input, shape index: {}]   ;;  %s202_s3 = inlined_call_operand.vmem [shape: f32[16,32], index: 3, kind: input, shape index: {}]   ;;  %s203_s4 = inlined_call_operand.vmem [shape: f32[16,32], index: 4, kind: output, shape index: {}]  }
   0x1   :  { %126 = vmatprep.subr.bf16.mxu0 %v138_v0  ;;  %v136_v1 = vld [vmem:[%s199_s1] sm:$0xff]   ;;  %130 = vmatprep.mubr.msk.bf16.mxu0 %vm139_vm1, %v138_v0  ;;  %23 = vst.msk [vmem:[#allocation2] sm:$0xff] %vm22_vm0, %v138_v0  ;;  %24 = vst.msk [vmem:[#allocation2 + $0x8] sm:$0xff] %vm22_vm0, %v138_v0  ;;  %v137_v2 = vld [vmem:[%s199_s1 + $0x8] sm:$0xff]  }
   0x2   :  { %127 = vmatpush3.bf16.msra.mxu0 %v136_v1  ;;  %v27_v3 = vld [vmem:[%s200_s0] sm:$0xff]  ;;  %v28_v4 = vld [vmem:[%s200_s0 + $0x8] sm:$0xff] }
   0x3   :  { %128 = vmatprep.subr.bf16.mxu0 %v138_v0  ;;  %v29_v5 = vpack.c.bf16 %v28_v4, %v27_v3  ;;  %v122_v14 = vld [vmem:[%s201_s2] ss:$0 sm:$0xff]  ;;  %v110_v19 = vld [vmem:[%s202_s3 + $0x8] sm:$0xff] }
   0x4   :  { %v109_v16 = vld [vmem:[%s202_s3] sm:$0xff] }
   0x6   :  { %129 = vmatpush3.bf16.msra.mxu0 %v137_v2 }
   0x8   :  { %v25_v6 = vld [vmem:[#allocation2] sm:$0xff]  ;;  %v26_v8 = vld [vmem:[#allocation2 + $0x8] sm:$0xff] }
   0x9   :  { %131 = vmatmul.mubr.msk.bf16.vlgmr.msra.gmra.mrb[0].mxu0 %vm22_vm0, %v29_v5 }
  0xdc   :  { %v84_v7 = vpop.f32.mrb[0].mxu0 }
  0xdd   :  { %v91_v9 = vadd.f32 %v84_v7, %v25_v6  ;;  %v132_v10 = vpop.f32.mrb[1].mxu0 }
  0xde   :  { %v87_v11 = vpop.f32.mrb[2].mxu0 }
  0xdf   :  { %93 = vst.msk [vmem:[#allocation2] sm:$0xff] %vm22_vm0, %v91_v9  ;;  %v92_v12 = vadd.f32 %v87_v11, %v26_v8  ;;  %v133_v13 = vpop.f32.mrb[3].mxu0 }
  0xe1   :  { %94 = vst.msk [vmem:[#allocation2 + $0x8] sm:$0xff] %vm22_vm0, %v92_v12 }
  0xe6   :  { %v98_v15 = vld [vmem:[#allocation2] sm:$0xff] }
  0xe7   :  { %v107_v17 = vadd.f32 %v122_v14, %v98_v15 }
  0xe8   :  { %v99_v18 = vld [vmem:[#allocation2 + $0x8] sm:$0xff] }
  0xe9   :  { %v111_v20 = vadd.f32 %v109_v16, %v107_v17  ;;  %v108_v21 = vadd.f32 %v122_v14, %v99_v18 }
  0xeb   :  { %113 = vst.msk [vmem:[%s203_s4] sm:$0xff] %vm22_vm0, %v111_v20  ;;  %v112_v22 = vadd.f32 %v110_v19, %v108_v21 }
  0xed   :  { %114 = vst.msk [vmem:[%s203_s4 + $0x8] sm:$0xff] %vm22_vm0, %v112_v22 }

// kernel: transformer_forward.25
= control target key start
LH: loop header
LB: loop body
LE: loop exit
PB: predicated region body
PF: predicated region fallthrough
CT: control target
= control target key end

     0   :  { %vm23_vm0 = vcmask 261120   ;;  %v187_v14 = vmov 0.0   ;;  %vm188_vm1 = vmmov 0   ;;  %vm151_vm6 = vcmask 785408   ;;  %s251_s0 = inlined_call_operand.vmem [shape: f32[16,32], index: 0, kind: input, shape index: {}]   ;;  %s252_s3 = inlined_call_operand.vmem [shape: bf16[32,96], index: 3, kind: input, shape index: {}]   ;;  %s253_s1 = inlined_call_operand.vmem [shape: f32[1,32], index: 1, kind: input, shape index: {}]   ;;  %s254_s2 = inlined_call_operand.vmem [shape: f32[1,32], index: 2, kind: input, shape index: {}]   ;;  %s255_s4 = inlined_call_operand.vmem [shape: f32[1,96], index: 4, kind: input, shape index: {}]   ;;  %s256_s5 = inlined_call_operand.vmem [shape: f32[16,96], index: 5, kind: output, shape index: {}]  }
   0x1   :  { %v21_v0 = vld [vmem:[%s251_s0] sm:$0xff]  ;;  %v22_v1 = vld [vmem:[%s251_s0 + $0x8] sm:$0xff]  ;;  %167 = vmatprep.subr.bf16.mxu0 %v187_v14  ;;  %171 = vmatprep.mubr.msk.bf16.mxu0 %vm188_vm1, %v187_v14 }
   0x2   :  { %v24_v2 = vsel %vm23_vm0, %v21_v0, 0.0  ;;  %v27_v3 = vsel %vm23_vm0, %v22_v1, 0.0  ;;  %v177_v15 = vld [vmem:[%s252_s3] sm:$0xff]   ;;  %v178_v16 = vld [vmem:[%s252_s3 + $0x8] sm:$0xff]  }
   0x3   :  { %25 = vadd.xlane.f32.xlu0 %v24_v2  ;;  %168 = vmatpush3.bf16.msra.mxu0 %v177_v15  ;;  %v158_v33 = vld [vmem:[%s253_s1] ss:$0 sm:$0xff] }
   0x4   :  { %169 = vmatprep.subr.bf16.mxu0 %v187_v14  ;;  %v159_v39 = vld [vmem:[%s254_s2] ss:$0 sm:$0xff] }
   0x5   :  { %v160_v44 = vld [vmem:[%s255_s4] ss:$0 sm:$0xff] }
   0x7   :  { %28 = vadd.xlane.f32.xlu0 %v27_v3  ;;  %170 = vmatpush3.bf16.msra.mxu0 %v178_v16 }
  0x90   :  { %v26_v4 = vpop.xlane.xlu0 %25 }
  0x91   :  { %v31_v5 = vmul.f32 0.03125, %v26_v4 }
  0x93   :  { %v33_v6 = vsub.f32 %v21_v0, %v31_v5 }
  0x94   :  { %v29_v7 = vpop.xlane.xlu0 %28 }
  0x95   :  { %v32_v8 = vmul.f32 0.03125, %v29_v7  ;;  %v35_v9 = vmul.f32 %v33_v6, %v33_v6  ;;  %v70_v35 = vmul.f32 %v158_v33, %v33_v6 }
  0x97   :  { %v34_v10 = vsub.f32 %v22_v1, %v32_v8  ;;  %v37_v11 = vsel %vm23_vm0, %v35_v9, 0.0 }
  0x98   :  { %38 = vadd.xlane.f32.xlu1 %v37_v11 }
  0x99   :  { %v36_v12 = vmul.f32 %v34_v10, %v34_v10  ;;  %v71_v36 = vmul.f32 %v158_v33, %v34_v10 }
  0x9b   :  { %v40_v13 = vsel %vm23_vm0, %v36_v12, 0.0 }
  0x9c   :  { %41 = vadd.xlane.f32.xlu1 %v40_v13 }
 0x125   :  { %v39_v17 = vpop.xlane.xlu1 %38 }
 0x126   :  { %v43_v18 = vmul.f32 0.032258064, %v39_v17 }
 0x128   :  { %179 = vrsqrt.f32 %v43_v18  ;;  %vm47_vm2 = vcmp.eq.f32.partialorder %v43_v18, inf  ;;  %v50_v23 = vand.u32 2147483648, %v43_v18  ;;  %vm49_vm3 = vcmp.eq.f32.partialorder %v43_v18, 0.0 }
 0x129   :  { %v42_v19 = vpop.xlane.xlu1 %41 }
 0x12a   :  { %v44_v20 = vmul.f32 0.032258064, %v42_v19 }
 0x12c   :  { %181 = vrsqrt.f32 %v44_v20  ;;  %vm54_vm4 = vcmp.eq.f32.partialorder %v44_v20, inf  ;;  %v57_v29 = vand.u32 2147483648, %v44_v20  ;;  %vm56_vm5 = vcmp.eq.f32.partialorder %v44_v20, 0.0 }
 0x132   :  { %v180_v21 = vpop.eup %179 }
 0x133   :  { %v46_v22 = vmul.f32 %v180_v21, %v43_v18 }
 0x135   :  { %v48_v24 = vsel %vm47_vm2, %v43_v18, %v46_v22 }
 0x136   :  { %v182_v25 = vpop.eup %181  ;;  %v51_v26 = vsel %vm49_vm3, %v50_v23, %v48_v24 }
 0x137   :  { %v59_v27 = vadd.f32 1e-06, %v51_v26  ;;  %v53_v28 = vmul.f32 %v182_v25, %v44_v20 }
 0x139   :  { %183 = vrcp.f32 %v59_v27  ;;  %v55_v30 = vsel %vm54_vm4, %v44_v20, %v53_v28 }
 0x13a   :  { %v58_v31 = vsel %vm56_vm5, %v57_v29, %v55_v30 }
 0x13b   :  { %v60_v32 = vadd.f32 1e-06, %v58_v31 }
 0x13d   :  { %185 = vrcp.f32 %v60_v32 }
 0x143   :  { %v184_v34 = vpop.eup %183 }
 0x144   :  { %v72_v37 = vmul.f32 %v184_v34, %v70_v35 }
 0x146   :  { %v81_v41 = vadd.f32 %v159_v39, %v72_v37 }
 0x147   :  { %v186_v38 = vpop.eup %185 }
 0x148   :  { %v73_v40 = vmul.f32 %v186_v38, %v71_v36 }
 0x14a   :  { %v82_v42 = vadd.f32 %v159_v39, %v73_v40 }
 0x14c   :  { %v83_v43 = vpack.c.bf16 %v82_v42, %v81_v41 }
 0x14e   :  { %172 = vmatmul.mubr.msk.bf16.vlgmr.msra.gmra.mrb[0].mxu0 %vm23_vm0, %v83_v43 }
 0x221   :  { %v144_v45 = vpop.f32.mrb[0].mxu0 }
 0x222   :  { %v145_v46 = vadd.f32 %v160_v44, %v144_v45  ;;  %v173_v47 = vpop.f32.mrb[1].mxu0 }
 0x223   :  { %v147_v48 = vpop.f32.mrb[2].mxu0 }
 0x224   :  { %152 = vst.msk [vmem:[%s256_s5] sm:$0xff] %vm151_vm6, %v145_v46  ;;  %v148_v49 = vadd.f32 %v160_v44, %v147_v48  ;;  %v174_v50 = vpop.f32.mrb[3].mxu0 }
 0x226   :  { %153 = vst.msk [vmem:[%s256_s5 + $0x8] sm:$0xff] %vm151_vm6, %v148_v49 }

// kernel: transformer_forward.28
= control target key start
LH: loop header
LB: loop body
LE: loop exit
PB: predicated region body
PF: predicated region fallthrough
CT: control target
= control target key end

     0   :  { %vm29_vm0 = vcmask 261120   ;;  %v355_v14 = vmov 0.0   ;;  %vm356_vm1 = vmmov 0   ;;  %s490_s0 = inlined_call_operand.vmem [shape: f32[16,32], index: 0, kind: input, shape index: {}]   ;;  %s491_s3 = inlined_call_operand.vmem [shape: bf16[32,128], index: 3, kind: input, shape index: {}]   ;;  %s492_s5 = inlined_call_operand.vmem [shape: bf16[128,32], index: 5, kind: input, shape index: {}]   ;;  %s493_s1 = inlined_call_operand.vmem [shape: f32[1,32], index: 1, kind: input, shape index: {}]   ;;  %s494_s2 = inlined_call_operand.vmem [shape: f32[1,32], index: 2, kind: input, shape index: {}]   ;;  %s495_s4 = inlined_call_operand.vmem [shape: f32[1,128], index: 4, kind: input, shape index: {}]   ;;  %s496_s6 = inlined_call_operand.vmem [shape: f32[1,32], index: 6, kind: input, shape index: {}]   ;;  %s497_s7 = inlined_call_operand.vmem [shape: f32[16,32], index: 7, kind: output, shape index: {}]  }
   0x1   :  { %v400_v0 = vld [vmem:[%s490_s0] sm:$0xff]  ;;  %v405_v1 = vld [vmem:[%s490_s0 + $0x8] sm:$0xff]  ;;  %307 = vmatprep.subr.bf16.mxu0 %v355_v14  ;;  %311 = vmatprep.mubr.msk.bf16.mxu0 %vm356_vm1, %v355_v14  ;;  %v341_v19 = vld [vmem:[%s492_s5 + $0x10] sm:$0xff]  }
   0x2   :  { %v30_v2 = vsel %vm29_vm0, %v400_v0, 0.0  ;;  %v33_v3 = vsel %vm29_vm0, %v405_v1, 0.0  ;;  %v337_v15 = vld [vmem:[%s491_s3] sm:$0xff]   ;;  %315 = vmatprep.subr.bf16.mxu1 %v355_v14  ;;  %331 = vmatprep.mubr.msk.bf16.mxu1 %vm356_vm1, %v355_v14  ;;  %v338_v16 = vld [vmem:[%s491_s3 + $0x8] sm:$0xff]   ;;  %v342_v20 = vld [vmem:[%s492_s5 + $0x18] sm:$0xff]  }
   0x3   :  { %31 = vadd.xlane.f32.xlu0 %v30_v2  ;;  %308 = vmatpush3.bf16.msra.mxu0 %v337_v15  ;;  %v339_v17 = vld [vmem:[%s492_s5] sm:$0xff]   ;;  %v340_v18 = vld [vmem:[%s492_s5 + $0x8] sm:$0xff]   ;;  %v345_v50 = vld [vmem:[%s492_s5 + $0x30] sm:$0xff]  }
   0x4   :  { %309 = vmatprep.subr.bf16.mxu0 %v355_v14  ;;  %316 = vmatpush3.bf16.msra.mxu1 %v339_v17  ;;  %v343_v21 = vld [vmem:[%s492_s5 + $0x20] sm:$0xff]   ;;  %v344_v22 = vld [vmem:[%s492_s5 + $0x28] sm:$0xff]   ;;  %v346_v51 = vld [vmem:[%s492_s5 + $0x38] sm:$0xff]  }
   0x5   :  { %317 = vmatprep.subr.bf16.mxu1 %v355_v14  ;;  %v280_v39 = vld [vmem:[%s493_s1] ss:$0 sm:$0xff] }
   0x6   :  { %v281_v45 = vld [vmem:[%s494_s2] ss:$0 sm:$0xff] }
   0x7   :  { %34 = vadd.xlane.f32.xlu0 %v33_v3  ;;  %310 = vmatpush3.bf16.msra.mxu0 %v338_v16  ;;  %v282_v52 = vld [vmem:[%s495_s4] ss:$0 sm:$0xff] }
   0x8   :  { %318 = vmatpush3.bf16.msra.mxu1 %v340_v18  ;;  %v286_v62 = vld [vmem:[%s496_s6] ss:$0 sm:$0xff] }
   0x9   :  { %319 = vmatprep.subr.bf16.mxu1 %v355_v14 }
   0xc   :  { %320 = vmatpush3.bf16.msra.mxu1 %v341_v19 }
   0xd   :  { %321 = vmatprep.subr.bf16.mxu1 %v355_v14 }
  0x10   :  { %322 = vmatpush3.bf16.msra.mxu1 %v342_v20 }
  0x11   :  { %323 = vmatprep.subr.bf16.mxu1 %v355_v14 }
  0x14   :  { %324 = vmatpush3.bf16.msra.mxu1 %v343_v21 }
  0x15   :  { %325 = vmatprep.subr.bf16.mxu1 %v355_v14 }
  0x18   :  { %326 = vmatpush3.bf16.msra.mxu1 %v344_v22 }
  0x19   :  { %327 = vmatprep.subr.bf16.mxu1 %v355_v14 }
  0x1c   :  { %328 = vmatpush3.bf16.msra.mxu1 %v345_v50 }
  0x1d   :  { %329 = vmatprep.subr.bf16.mxu1 %v355_v14 }
  0x20   :  { %330 = vmatpush3.bf16.msra.mxu1 %v346_v51 }
  0x90   :  { %v32_v4 = vpop.xlane.xlu0 %31 }
  0x91   :  { %v37_v5 = vmul.f32 0.03125, %v32_v4 }
  0x93   :  { %v412_v6 = vsub.f32 %v400_v0, %v37_v5 }
  0x94   :  { %v35_v7 = vpop.xlane.xlu0 %34 }
  0x95   :  { %v38_v8 = vmul.f32 0.03125, %v35_v7  ;;  %v41_v9 = vmul.f32 %v412_v6, %v412_v6  ;;  %v76_v41 = vmul.f32 %v280_v39, %v412_v6 }
  0x97   :  { %v417_v10 = vsub.f32 %v405_v1, %v38_v8  ;;  %v43_v11 = vsel %vm29_vm0, %v41_v9, 0.0 }
  0x98   :  { %44 = vadd.xlane.f32.xlu1 %v43_v11 }
  0x99   :  { %v42_v12 = vmul.f32 %v417_v10, %v417_v10  ;;  %v77_v42 = vmul.f32 %v280_v39, %v417_v10 }
  0x9b   :  { %v46_v13 = vsel %vm29_vm0, %v42_v12, 0.0 }
  0x9c   :  { %47 = vadd.xlane.f32.xlu1 %v46_v13 }
 0x125   :  { %v45_v23 = vpop.xlane.xlu1 %44 }
 0x126   :  { %v49_v24 = vmul.f32 0.032258064, %v45_v23 }
 0x128   :  { %347 = vrsqrt.f32 %v49_v24  ;;  %vm53_vm2 = vcmp.eq.f32.partialorder %v49_v24, inf  ;;  %v56_v29 = vand.u32 2147483648, %v49_v24  ;;  %vm55_vm3 = vcmp.eq.f32.partialorder %v49_v24, 0.0 }
 0x129   :  { %v48_v25 = vpop.xlane.xlu1 %47 }
 0x12a   :  { %v50_v26 = vmul.f32 0.032258064, %v48_v25 }
 0x12c   :  { %349 = vrsqrt.f32 %v50_v26  ;;  %vm60_vm4 = vcmp.eq.f32.partialorder %v50_v26, inf  ;;  %v63_v35 = vand.u32 2147483648, %v50_v26  ;;  %vm62_vm5 = vcmp.eq.f32.partialorder %v50_v26, 0.0 }
 0x132   :  { %v348_v27 = vpop.eup %347 }
 0x133   :  { %v52_v28 = vmul.f32 %v348_v27, %v49_v24 }
 0x135   :  { %v54_v30 = vsel %vm53_vm2, %v49_v24, %v52_v28 }
 0x136   :  { %v350_v31 = vpop.eup %349  ;;  %v57_v32 = vsel %vm55_vm3, %v56_v29, %v54_v30 }
 0x137   :  { %v65_v33 = vadd.f32 1e-06, %v57_v32  ;;  %v59_v34 = vmul.f32 %v350_v31, %v50_v26 }
 0x139   :  { %351 = vrcp.f32 %v65_v33  ;;  %v61_v36 = vsel %vm60_vm4, %v50_v26, %v59_v34 }
 0x13a   :  { %v64_v37 = vsel %vm62_vm5, %v63_v35, %v61_v36 }
 0x13b   :  { %v66_v38 = vadd.f32 1e-06, %v64_v37 }
 0x13d   :  { %353 = vrcp.f32 %v66_v38 }
 0x143   :  { %v352_v40 = vpop.eup %351 }
 0x144   :  { %v78_v43 = vmul.f32 %v352_v40, %v76_v41 }
 0x146   :  { %v87_v47 = vadd.f32 %v281_v45, %v78_v43 }
 0x147   :  { %v354_v44 = vpop.eup %353 }
 0x148   :  { %v79_v46 = vmul.f32 %v354_v44, %v77_v42 }
 0x14a   :  { %v88_v48 = vadd.f32 %v281_v45, %v79_v46 }
 0x14c   :  { %v89_v49 = vpack.c.bf16 %v88_v48, %v87_v47 }
 0x14e   :  { %312 = vmatmul.mubr.msk.bf16.vlgmr.msra.gmra.mrb[0].mxu0 %vm29_vm0, %v89_v49 }
 0x221   :  { %v150_v53 = vpop.f32.mrb[0].mxu0 }
 0x222   :  { %v151_v54 = vadd.f32 %v282_v52, %v150_v53  ;;  %v313_v55 = vpop.f32.mrb[1].mxu0 }
 0x223   :  { %v153_v56 = vpop.f32.mrb[2].mxu0 }
 0x224   :  { %v154_v57 = vadd.f32 %v282_v52, %v153_v56  ;;  %v314_v58 = vpop.f32.mrb[3].mxu0  ;;  %v157_v59 = vmax.f32 %v151_v54, 0.0 }
 0x226   :  { %v158_v60 = vmax.f32 %v154_v57, 0.0 }
 0x228   :  { %v159_v61 = vpack.c.bf16 %v158_v60, %v157_v59 }
 0x22a   :  { %332 = vmatmul.mubr.bf16.vlgmr.msra.gmra.mrb[0].mxu1 %v159_v61 }
 0x2fd   :  { %v265_v63 = vpop.f32.mrb[0].mxu1 }
 0x2fe   :  { %v266_v2 = vadd.f32 %v286_v62, %v265_v63  ;;  %v333_v3 = vpop.f32.mrb[1].mxu1 }
 0x2ff   :  { %v268_v4 = vpop.f32.mrb[2].mxu1 }
 0x300   :  { %v272_v5 = vadd.f32 %v266_v2, %v400_v0  ;;  %v269_v6 = vadd.f32 %v286_v62, %v268_v4  ;;  %v334_v7 = vpop.f32.mrb[3].mxu1 }
 0x302   :  { %274 = vst.msk [vmem:[%s497_s7] sm:$0xff] %vm29_vm0, %v272_v5  ;;  %v273_v8 = vadd.f32 %v269_v6, %v405_v1 }
 0x304   :  { %275 = vst.msk [vmem:[%s497_s7 + $0x8] sm:$0xff] %vm29_vm0, %v273_v8 }

// kernel: transformer_forward.26
= control target key start
LH: loop header
LB: loop body
LE: loop exit
PB: predicated region body
PF: predicated region fallthrough
CT: control target
= control target key end

     0   :  { %s956_s15 = smov 0   ;;  %s1044_s0 = inlined_call_operand.vmem [shape: f32[2,4,8,8], index: 0, kind: input, shape index: {}]   ;;  %s1045_s1 = inlined_call_operand.vmem [shape: f32[2,4,8,8], index: 1, kind: input, shape index: {}]   ;;  %s1046_s2 = inlined_call_operand.vmem [shape: f32[2,4,8,8], index: 2, kind: input, shape index: {}]   ;;  %s1047_s3 = inlined_call_operand.vmem [shape: f32[2,1,8], index: 3, kind: input, shape index: {}]   ;;  %s1048_s4 = inlined_call_operand.vmem [shape: f32[2,4,8,8], index: 4, kind: output, shape index: {}]  }
   0x1 LB: > { %s803_s16 = sadd.s32 4294967295, %s927_s15   ;;  %p807_p0 = scmp.ge.s32.totalorder %s927_s15, 1  ;;  %s927_s15 = sphi %s956_s15, %s14_s15  }
   0x2   : > { %p190_p1 = scmp.lt.s32.totalorder %s927_s15, 3 }
   0x4   : > { %p191_p2 = pnand %p807_p0, %p190_p1 }
   0x5   : > { %p229_p3 = scmp.lt.s32.totalorder (!%p191_p2), %s803_s16, 1  ;;  %v929_v0 = vmov (!%p191_p2), 0.0   ;;  %vm930_vm0 = vmmov (!%p191_p2), 0   ;;  %vm278_vm1 = vcmask (!%p191_p2), 64512   ;;  %vm529_vm3 = vcmask (!%p191_p2), 1043456  }
   0x6   : > { %194 = sbr.rel (%p191_p2) target bundleno = 785 (0x311), region = 36  ;;  %847 = vmatprep.subr.bf16.mxu0 (!%p191_p2), %v929_v0  ;;  %853 = vmatprep.subr.bf16.mxu1 (!%p191_p2), %v929_v0 }
   0x7   : > { %849 = vmatprep.mubr.msk.bf16.mxu0 (!%p191_p2), %vm930_vm0, %v929_v0  ;;  %855 = vmatprep.mubr.msk.bf16.mxu1 (!%p191_p2), %vm930_vm0, %v929_v0 }
   0xd   : > { %s1050_s16 = smov (!%p229_p3, %s803_s16), 1 }
   0xe   : > { %s973_s17 = sshll.u32 %s1050_s16, 5  ;;  %s246_s26 = scalar_lea.vmem %s1047_s3, %s1050_s16 }
   0xf   : > { %s238_s20 = scalar_lea.vmem %s1045_s1, %s973_s17  ;;  %s233_s23 = scalar_lea.vmem %s1044_s0, %s973_s17  ;;  %v820_v21 = vld [vmem:[%s246_s26] ss:$0 sm:$0xff] }
  0x10   : > { %v261_v1 = vld [vmem:[%s238_s20] sm:$0xff]  ;;  %v262_v2 = vld [vmem:[%s238_s20 + $0x8] sm:$0xff]  ;;  %v263_v5 = vld [vmem:[%s238_s20 + $0x10] sm:$0xff]  ;;  %vm473_vm2 = vcmp.eq.f32.partialorder %v820_v21, 0.0  ;;  %s243_s29 = scalar_lea.vmem %s1046_s2, %s973_s17  ;;  %s251_s6 = scalar_lea.vmem %s1048_s4, %s973_s17 }
  0x11   : > { %v265_v3 = vpack.c.bf16 %v261_v1, %v261_v1  ;;  %v266_v4 = vpack.c.bf16 %v262_v2, %v262_v2  ;;  %v264_v6 = vld [vmem:[%s238_s20 + $0x18] sm:$0xff]  ;;  %v253_v9 = vld [vmem:[%s233_s23] sm:$0xff]  ;;  %v254_v10 = vld [vmem:[%s233_s23 + $0x8] sm:$0xff]  ;;  %v267_v11 = vpack.c.bf16 %v263_v5, %v263_v5 }
  0x12   : > { %v268_v12 = vpack.c.bf16 %v264_v6, %v264_v6  ;;  %v257_v13 = vpack.c.bf16 %v253_v9, %v253_v9  ;;  %v258_v14 = vpack.c.bf16 %v254_v10, %v254_v10  ;;  %v255_v17 = vld [vmem:[%s233_s23 + $0x10] sm:$0xff]  ;;  %v256_v18 = vld [vmem:[%s233_s23 + $0x18] sm:$0xff]  ;;  %v270_v10 = vld [vmem:[%s243_s29 + $0x8] sm:$0xff] }
  0x13   : > { %v283_v7 = vsel %vm278_vm1, %v265_v3, 0  ;;  %v329_v8 = vsel %vm278_vm1, %v266_v4, 0  ;;  %v375_v15 = vsel %vm278_vm1, %v267_v11, 0  ;;  %v259_v19 = vpack.c.bf16 %v255_v17, %v255_v17 }
  0x14   : > { %848 = vmatpush3.bf16.xpose.msra.mxu0 %v283_v7  ;;  %854 = vmatpush3.bf16.xpose.msra.mxu1 %v329_v8  ;;  %v421_v16 = vsel %vm278_vm1, %v268_v12, 0  ;;  %v260_v20 = vpack.c.bf16 %v256_v18, %v256_v18  ;;  %v269_v7 = vld [vmem:[%s243_s29] sm:$0xff]  ;;  %v274_v11 = vpack.c.bf16 %v270_v10, %v270_v10 }
  0x15   : > { %859 = vmatprep.subr.bf16.mxu0 %v929_v0  ;;  %865 = vmatprep.subr.bf16.mxu1 %v929_v0  ;;  %v273_v8 = vpack.c.bf16 %v269_v7, %v269_v7 }
  0x16   : > { %v577_v12 = vsel %vm529_vm3, %v274_v11, 0 }
  0x17   : > { %v531_v9 = vsel %vm529_vm3, %v273_v8, 0 }
  0x1b   : > { %850 = vmatmul.mubr.msk.bf16.vlgmr.msra.gmra.mrb[0].mxu0 %vm278_vm1, %v257_v13  ;;  %856 = vmatmul.mubr.msk.bf16.vlgmr.msra.gmra.mrb[0].mxu1 %vm278_vm1, %v258_v14  ;;  %v271_v13 = vld [vmem:[%s243_s29 + $0x10] sm:$0xff] }
  0x1c   : > { %860 = vmatpush3.bf16.xpose.msra.mxu0 %v375_v15  ;;  %866 = vmatpush3.bf16.xpose.msra.mxu1 %v421_v16  ;;  %v275_v14 = vpack.c.bf16 %v271_v13, %v271_v13  ;;  %v272_v16 = vld [vmem:[%s243_s29 + $0x18] sm:$0xff] }
  0x1d   : > { %861 = vmatprep.mubr.msk.bf16.mxu0 %vm930_vm0, %v929_v0  ;;  %867 = vmatprep.mubr.msk.bf16.mxu1 %vm930_vm0, %v929_v0  ;;  %v276_v17 = vpack.c.bf16 %v272_v16, %v272_v16 }
  0x1e   : > { %871 = vmatprep.subr.bf16.mxu0 %v929_v0  ;;  %877 = vmatprep.subr.bf16.mxu1 %v929_v0  ;;  %v623_v15 = vsel %vm529_vm3, %v275_v14, 0 }
  0x1f   : > { %v669_v18 = vsel %vm529_vm3, %v276_v17, 0 }
  0x23   : > { %862 = vmatmul.mubr.msk.bf16.vlgmr.msra.gmra.mrb[4].mxu0 %vm278_vm1, %v259_v19  ;;  %868 = vmatmul.mubr.msk.bf16.vlgmr.msra.gmra.mrb[4].mxu1 %vm278_vm1, %v260_v20 }
  0x24   : > { %873 = vmatprep.mubr.msk.bf16.mxu0 %vm930_vm0, %v929_v0  ;;  %879 = vmatprep.mubr.msk.bf16.mxu1 %vm930_vm0, %v929_v0 }
  0x25   : > { %872 = vmatpush3.bf16.msra.mxu0 %v531_v9  ;;  %878 = vmatpush3.bf16.msra.mxu1 %v577_v12 }
  0x26   : > { %883 = vmatprep.subr.bf16.mxu0 %v929_v0  ;;  %889 = vmatprep.subr.bf16.mxu1 %v929_v0 }
  0xee   : > { %v319_v22 = vpop.f32.mrb[0].mxu0  ;;  %v365_v23 = vpop.f32.mrb[0].mxu1 }
  0xef   : > { %v463_v24 = vmul.f32 0.35355338, %v319_v22  ;;  %v851_v25 = vpop.f32.mrb[1].mxu0  ;;  %v464_v26 = vmul.f32 0.35355338, %v365_v23  ;;  %v857_v27 = vpop.f32.mrb[1].mxu1 }
  0xf0   : > { %v322_v28 = vpop.f32.mrb[2].mxu0  ;;  %v368_v29 = vpop.f32.mrb[2].mxu1 }
  0xf1   : > { %v852_v30 = vpop.f32.mrb[3].mxu0  ;;  %v858_v31 = vpop.f32.mrb[3].mxu1  ;;  %v474_v32 = vsel %vm473_vm2, -1e+09, %v463_v24  ;;  %v475_v33 = vsel %vm473_vm2, -1e+09, %v464_v26 }
  0xf2   : > { %v478_v34 = vsel %vm278_vm1, %v474_v32, -inf  ;;  %v481_v35 = vsel %vm278_vm1, %v475_v33, -inf }
  0xf3   : > { %479 = vmax.xlane.f32.xlu0 %v478_v34 }
  0xf6   : > { %v411_v36 = vpop.f32.mrb[4].mxu0  ;;  %v457_v37 = vpop.f32.mrb[4].mxu1 }
  0xf7   : > { %v465_v38 = vmul.f32 0.35355338, %v411_v36  ;;  %482 = vmax.xlane.f32.xlu0 %v481_v35  ;;  %v863_v39 = vpop.f32.mrb[5].mxu0  ;;  %v466_v40 = vmul.f32 0.35355338, %v457_v37  ;;  %v869_v41 = vpop.f32.mrb[5].mxu1 }
  0xf8   : > { %v414_v42 = vpop.f32.mrb[6].mxu0  ;;  %v460_v43 = vpop.f32.mrb[6].mxu1 }
  0xf9   : > { %v864_v44 = vpop.f32.mrb[7].mxu0  ;;  %v870_v45 = vpop.f32.mrb[7].mxu1  ;;  %v476_v46 = vsel %vm473_vm2, -1e+09, %v465_v38  ;;  %v477_v47 = vsel %vm473_vm2, -1e+09, %v466_v40 }
  0xfa   : > { %v484_v48 = vsel %vm278_vm1, %v476_v46, -inf  ;;  %v487_v49 = vsel %vm278_vm1, %v477_v47, -inf }
  0xfb   : > { %485 = vmax.xlane.f32.xlu1 %v484_v48 }
  0xff   : > { %488 = vmax.xlane.f32.xlu1 %v487_v49 }
 0x180   : > { %v480_v50 = vpop.xlane.xlu0 %479 }
 0x181   : > { %v490_v51 = vsub.f32 %v474_v32, %v480_v50 }
 0x183   : > { %v494_v52 = vmul.f32 1.442695, %v490_v51 }
 0x184   : > { %v483_v53 = vpop.xlane.xlu0 %482 }
 0x185   : > { %905 = vpow2.f32 %v494_v52  ;;  %v491_v54 = vsub.f32 %v475_v33, %v483_v53 }
 0x187   : > { %v496_v55 = vmul.f32 1.442695, %v491_v54 }
 0x188   : > { %v486_v56 = vpop.xlane.xlu1 %485 }
 0x189   : > { %907 = vpow2.f32 %v496_v55  ;;  %v492_v57 = vsub.f32 %v476_v46, %v486_v56 }
 0x18b   : > { %v498_v58 = vmul.f32 1.442695, %v492_v57 }
 0x18c   : > { %v489_v59 = vpop.xlane.xlu1 %488 }
 0x18d   : > { %909 = vpow2.f32 %v498_v58  ;;  %v493_v60 = vsub.f32 %v477_v47, %v489_v59 }
 0x18f   : > { %v906_v61 = vpop.eup %905  ;;  %v500_v62 = vmul.f32 1.442695, %v493_v60 }
 0x190   : > { %v502_v63 = vsel %vm278_vm1, %v906_v61, 0.0 }
 0x191   : > { %911 = vpow2.f32 %v500_v62  ;;  %503 = vadd.xlane.f32.xlu0 %v502_v63 }
 0x193   : > { %v908_v1 = vpop.eup %907 }
 0x194   : > { %v505_v2 = vsel %vm278_vm1, %v908_v1, 0.0 }
 0x195   : > { %506 = vadd.xlane.f32.xlu1 %v505_v2 }
 0x197   : > { %v910_v3 = vpop.eup %909 }
 0x198   : > { %v508_v4 = vsel %vm278_vm1, %v910_v3, 0.0 }
 0x199   : > { %509 = vadd.xlane.f32.xlu0 %v508_v4 }
 0x19b   : > { %v912_v5 = vpop.eup %911 }
 0x19c   : > { %v511_v6 = vsel %vm278_vm1, %v912_v5, 0.0 }
 0x19d   : > { %512 = vadd.xlane.f32.xlu1 %v511_v6 }
 0x21e   : > { %v504_v19 = vpop.xlane.xlu0 %503 }
 0x21f   : > { %913 = vrcp.f32 %v504_v19 }
 0x222   : > { %v507_v20 = vpop.xlane.xlu1 %506 }
 0x223   : > { %915 = vrcp.f32 %v507_v20 }
 0x226   : > { %v510_v21 = vpop.xlane.xlu0 %509 }
 0x227   : > { %917 = vrcp.f32 %v510_v21 }
 0x229   : > { %v914_v22 = vpop.eup %913 }
 0x22a   : > { %v518_v23 = vmul.f32 %v914_v22, %v906_v61  ;;  %v513_v24 = vpop.xlane.xlu1 %512 }
 0x22b   : > { %919 = vrcp.f32 %v513_v24 }
 0x22c   : > { %v522_v25 = vpack.c.bf16 %v518_v23, %v518_v23 }
 0x22d   : > { %v916_v26 = vpop.eup %915 }
 0x22e   : > { %v519_v27 = vmul.f32 %v916_v26, %v908_v1  ;;  %874 = vmatmul.mubr.msk.bf16.vlgmr.msra.gmra.mrb[8].mxu0 %vm278_vm1, %v522_v25 }
 0x22f   : > { %884 = vmatpush3.bf16.msra.mxu0 %v623_v15  ;;  %885 = vmatprep.mubr.msk.bf16.mxu0 %vm930_vm0, %v929_v0 }
 0x230   : > { %v523_v28 = vpack.c.bf16 %v519_v27, %v519_v27 }
 0x231   : > { %v918_v29 = vpop.eup %917 }
 0x232   : > { %v520_v30 = vmul.f32 %v918_v29, %v910_v3  ;;  %880 = vmatmul.mubr.msk.bf16.vlgmr.msra.gmra.mrb[8].mxu1 %vm278_vm1, %v523_v28 }
 0x233   : > { %890 = vmatpush3.bf16.msra.mxu1 %v669_v18  ;;  %891 = vmatprep.mubr.msk.bf16.mxu1 %vm930_vm0, %v929_v0 }
 0x234   : > { %v524_v31 = vpack.c.bf16 %v520_v30, %v520_v30 }
 0x235   : > { %v920_v32 = vpop.eup %919 }
 0x236   : > { %v521_v33 = vmul.f32 %v920_v32, %v912_v5  ;;  %886 = vmatmul.mubr.msk.bf16.vlgmr.msra.gmra.mrb[12].mxu0 %vm278_vm1, %v524_v31 }
 0x238   : > { %v525_v34 = vpack.c.bf16 %v521_v33, %v521_v33 }
 0x23a   : > { %892 = vmatmul.mubr.msk.bf16.vlgmr.msra.gmra.mrb[12].mxu1 %vm278_vm1, %v525_v34 }
 0x301   : > { %v567_v35 = vpop.f32.mrb[8].mxu0 }
 0x302   : > { %711 = vst.msk [vmem:[%s251_s6] sm:$0xff] %vm278_vm1, %v567_v35  ;;  %v875_v36 = vpop.f32.mrb[9].mxu0 }
 0x303   : > { %v570_v37 = vpop.f32.mrb[10].mxu0 }
 0x304   : > { %v876_v38 = vpop.f32.mrb[11].mxu0 }
 0x305   : > { %v613_v39 = vpop.f32.mrb[8].mxu1 }
 0x306   : > { %712 = vst.msk [vmem:[%s251_s6 + $0x8] sm:$0xff] %vm278_vm1, %v613_v39  ;;  %v881_v0 = vpop.f32.mrb[9].mxu1 }
 0x307   : > { %v616_v40 = vpop.f32.mrb[10].mxu1 }
 0x308   : > { %v882_v41 = vpop.f32.mrb[11].mxu1 }
 0x309   : > { %v659_v42 = vpop.f32.mrb[12].mxu0 }
 0x30a   : > { %713 = vst.msk [vmem:[%s251_s6 + $0x10] sm:$0xff] %vm278_vm1, %v659_v42  ;;  %v887_v43 = vpop.f32.mrb[13].mxu0 }
 0x30b   : > { %v662_v44 = vpop.f32.mrb[14].mxu0 }
 0x30c   : > { %v888_v45 = vpop.f32.mrb[15].mxu0 }
 0x30d   : > { %v705_v46 = vpop.f32.mrb[12].mxu1 }
 0x30e   : > { %714 = vst.msk [vmem:[%s251_s6 + $0x18] sm:$0xff] %vm278_vm1, %v705_v46  ;;  %v893_v47 = vpop.f32.mrb[13].mxu1 }
 0x30f   : > { %v708_v48 = vpop.f32.mrb[14].mxu1 }
 0x310   : > { %v894_v49 = vpop.f32.mrb[15].mxu1 }
 0x311 PF: > { %s14_s15 = sadd.s32 1, %s927_s15  }
 0x312   : > { %p11_p4 = scmp.ge.s32.totalorder %s14_s15, 4  }
 0x314   :  { %13 = sbr.rel (!%p11_p4) target bundleno = 1 (0x1), region = 75 }

// kernel: transformer_forward.33
= control target key start
LH: loop header
LB: loop body
LE: loop exit
PB: predicated region body
PF: predicated region fallthrough
CT: control target
= control target key end

     0   :  { %vm16_vm0 = vcmask 261120   ;;  %s136_s0 = inlined_call_operand.vmem [shape: f32[16,32], index: 0, kind: input, shape index: {}]   ;;  %s137_s1 = inlined_call_operand.vmem [shape: f32[1,32], index: 1, kind: input, shape index: {}]   ;;  %s138_s2 = inlined_call_operand.vmem [shape: f32[1,32], index: 2, kind: input, shape index: {}]   ;;  %s139_s3 = inlined_call_operand.vmem [shape: f32[16,32], index: 3, kind: output, shape index: {}]  }
   0x1   :  { %v14_v0 = vld [vmem:[%s136_s0] sm:$0xff]  ;;  %v15_v1 = vld [vmem:[%s136_s0 + $0x8] sm:$0xff] }
   0x2   :  { %v17_v2 = vsel %vm16_vm0, %v14_v0, 0.0  ;;  %v20_v3 = vsel %vm16_vm0, %v15_v1, 0.0  ;;  %v82_v30 = vld [vmem:[%s137_s1] ss:$0 sm:$0xff] }
   0x3   :  { %18 = vadd.xlane.f32.xlu0 %v17_v2  ;;  %v83_v33 = vld [vmem:[%s138_s2] ss:$0 sm:$0xff] }
   0x7   :  { %21 = vadd.xlane.f32.xlu0 %v20_v3 }
  0x90   :  { %v19_v4 = vpop.xlane.xlu0 %18 }
  0x91   :  { %v24_v5 = vmul.f32 0.03125, %v19_v4 }
  0x93   :  { %v26_v6 = vsub.f32 %v14_v0, %v24_v5 }
  0x94   :  { %v22_v7 = vpop.xlane.xlu0 %21 }
  0x95   :  { %v25_v8 = vmul.f32 0.03125, %v22_v7  ;;  %v28_v9 = vmul.f32 %v26_v6, %v26_v6  ;;  %v63_v31 = vmul.f32 %v82_v30, %v26_v6 }
  0x97   :  { %v27_v10 = vsub.f32 %v15_v1, %v25_v8  ;;  %v30_v11 = vsel %vm16_vm0, %v28_v9, 0.0 }
  0x98   :  { %31 = vadd.xlane.f32.xlu1 %v30_v11 }
  0x99   :  { %v29_v12 = vmul.f32 %v27_v10, %v27_v10  ;;  %v64_v35 = vmul.f32 %v82_v30, %v27_v10 }
  0x9b   :  { %v33_v13 = vsel %vm16_vm0, %v29_v12, 0.0 }
  0x9c   :  { %34 = vadd.xlane.f32.xlu1 %v33_v13 }
 0x125   :  { %v32_v14 = vpop.xlane.xlu1 %31 }
 0x126   :  { %v36_v15 = vmul.f32 0.032258064, %v32_v14 }
 0x128   :  { %84 = vrsqrt.f32 %v36_v15  ;;  %vm40_vm1 = vcmp.eq.f32.partialorder %v36_v15, inf  ;;  %v43_v20 = vand.u32 2147483648, %v36_v15  ;;  %vm42_vm2 = vcmp.eq.f32.partialorder %v36_v15, 0.0 }
 0x129   :  { %v35_v16 = vpop.xlane.xlu1 %34 }
 0x12a   :  { %v37_v17 = vmul.f32 0.032258064, %v35_v16 }
 0x12c   :  { %86 = vrsqrt.f32 %v37_v17  ;;  %vm47_vm3 = vcmp.eq.f32.partialorder %v37_v17, inf  ;;  %v50_v26 = vand.u32 2147483648, %v37_v17  ;;  %vm49_vm4 = vcmp.eq.f32.partialorder %v37_v17, 0.0 }
 0x132   :  { %v85_v18 = vpop.eup %84 }
 0x133   :  { %v39_v19 = vmul.f32 %v85_v18, %v36_v15 }
 0x135   :  { %v41_v21 = vsel %vm40_vm1, %v36_v15, %v39_v19 }
 0x136   :  { %v87_v22 = vpop.eup %86  ;;  %v44_v23 = vsel %vm42_vm2, %v43_v20, %v41_v21 }
 0x137   :  { %v52_v24 = vadd.f32 1e-06, %v44_v23  ;;  %v46_v25 = vmul.f32 %v87_v22, %v37_v17 }
 0x139   :  { %88 = vrcp.f32 %v52_v24  ;;  %v48_v27 = vsel %vm47_vm3, %v37_v17, %v46_v25 }
 0x13a   :  { %v51_v28 = vsel %vm49_vm4, %v50_v26, %v48_v27 }
 0x13b   :  { %v53_v29 = vadd.f32 1e-06, %v51_v28 }
 0x13d   :  { %90 = vrcp.f32 %v53_v29 }
 0x143   :  { %v89_v32 = vpop.eup %88 }
 0x144   :  { %v65_v34 = vmul.f32 %v89_v32, %v63_v31 }
 0x146   :  { %v74_v36 = vadd.f32 %v83_v33, %v65_v34 }
 0x147   :  { %v91_v37 = vpop.eup %90 }
 0x148   :  { %76 = vst.msk [vmem:[%s139_s3] sm:$0xff] %vm16_vm0, %v74_v36  ;;  %v66_v38 = vmul.f32 %v91_v37, %v64_v35 }
 0x14a   :  { %v75_v39 = vadd.f32 %v83_v33, %v66_v38 }
 0x14c   :  { %77 = vst.msk [vmem:[%s139_s3 + $0x8] sm:$0xff] %vm16_vm0, %v75_v39 }

// kernel: transformer_forward.34
= control target key start
LH: loop header
LB: loop body
LE: loop exit
PB: predicated region body
PF: predicated region fallthrough
CT: control target
= control target key end

     0   :  { %vm19_vm0 = vcmask 523264   ;;  %v132_v0 = vmov 0.0   ;;  %vm133_vm1 = vmmov 0   ;;  %vm43_vm2 = vcmask 261120   ;;  %s181_s1 = inlined_call_operand.vmem [shape: bf16[32,64], index: 1, kind: input, shape index: {}]   ;;  %s182_s0 = inlined_call_operand.vmem [shape: f32[16,32], index: 0, kind: input, shape index: {}]   ;;  %s183_s2 = inlined_call_operand.vmem [shape: f32[1,64], index: 2, kind: input, shape index: {}]   ;;  %s184_s3 = inlined_call_operand.vmem [shape: f32[16,64], index: 3, kind: output, shape index: {}]  }
   0x1   :  { %120 = vmatprep.subr.bf16.mxu0 %v132_v0  ;;  %v130_v1 = vld [vmem:[%s181_s1] sm:$0xff]   ;;  %124 = vmatprep.mubr.msk.bf16.mxu0 %vm133_vm1, %v132_v0  ;;  %20 = vst.msk [vmem:[#allocation2] sm:$0xff] %vm19_vm0, %v132_v0  ;;  %21 = vst.msk [vmem:[#allocation2 + $0x8] sm:$0xff] %vm19_vm0, %v132_v0  ;;  %v131_v2 = vld [vmem:[%s181_s1 + $0x8] sm:$0xff]  }
   0x2   :  { %121 = vmatpush3.bf16.msra.mxu0 %v130_v1  ;;  %v24_v3 = vld [vmem:[%s182_s0] sm:$0xff]  ;;  %v25_v4 = vld [vmem:[%s182_s0 + $0x8] sm:$0xff] }
   0x3   :  { %122 = vmatprep.subr.bf16.mxu0 %v132_v0  ;;  %v26_v5 = vpack.c.bf16 %v25_v4, %v24_v3  ;;  %v116_v14 = vld [vmem:[%s183_s2] ss:$0 sm:$0xff] }
   0x6   :  { %123 = vmatpush3.bf16.msra.mxu0 %v131_v2 }
   0x8   :  { %v22_v6 = vld [vmem:[#allocation2] sm:$0xff]  ;;  %v23_v8 = vld [vmem:[#allocation2 + $0x8] sm:$0xff] }
   0x9   :  { %125 = vmatmul.mubr.msk.bf16.vlgmr.msra.gmra.mrb[0].mxu0 %vm43_vm2, %v26_v5 }
  0xdc   :  { %v81_v7 = vpop.f32.mrb[0].mxu0 }
  0xdd   :  { %v88_v9 = vadd.f32 %v81_v7, %v22_v6  ;;  %v126_v10 = vpop.f32.mrb[1].mxu0 }
  0xde   :  { %v84_v11 = vpop.f32.mrb[2].mxu0 }
  0xdf   :  { %91 = vst.msk [vmem:[#allocation2] sm:$0xff] %vm19_vm0, %v88_v9  ;;  %v89_v12 = vadd.f32 %v84_v11, %v23_v8  ;;  %v127_v13 = vpop.f32.mrb[3].mxu0 }
  0xe1   :  { %92 = vst.msk [vmem:[#allocation2 + $0x8] sm:$0xff] %vm19_vm0, %v89_v12 }
  0xe6   :  { %v96_v15 = vld [vmem:[#allocation2] sm:$0xff] }
  0xe7   :  { %v105_v16 = vadd.f32 %v116_v14, %v96_v15 }
  0xe8   :  { %v97_v17 = vld [vmem:[#allocation2 + $0x8] sm:$0xff] }
  0xe9   :  { %107 = vst.msk [vmem:[%s184_s3] sm:$0xff] %vm19_vm0, %v105_v16  ;;  %v106_v18 = vadd.f32 %v116_v14, %v97_v17 }
  0xeb   :  { %108 = vst.msk [vmem:[%s184_s3 + $0x8] sm:$0xff] %vm19_vm0, %v106_v18 }

// kernel: transformer_forward.38
= control target key start
LH: loop header
LB: loop body
LE: loop exit
PB: predicated region body
PF: predicated region fallthrough
CT: control target
= control target key end

     0   :  { %vm23_vm0 = vcmask 261120   ;;  %v186_v14 = vmov 0.0   ;;  %vm187_vm1 = vmmov 0   ;;  %s252_s0 = inlined_call_operand.vmem [shape: f32[16,32], index: 0, kind: input, shape index: {}]   ;;  %s253_s3 = inlined_call_operand.vmem [shape: bf16[32,32], index: 3, kind: input, shape index: {}]   ;;  %s254_s1 = inlined_call_operand.vmem [shape: f32[1,32], index: 1, kind: input, shape index: {}]   ;;  %s255_s2 = inlined_call_operand.vmem [shape: f32[1,32], index: 2, kind: input, shape index: {}]   ;;  %s256_s4 = inlined_call_operand.vmem [shape: f32[1,32], index: 4, kind: input, shape index: {}]   ;;  %s257_s5 = inlined_call_operand.vmem [shape: f32[16,32], index: 5, kind: output, shape index: {}]  }
   0x1   :  { %v21_v0 = vld [vmem:[%s252_s0] sm:$0xff]  ;;  %v22_v1 = vld [vmem:[%s252_s0 + $0x8] sm:$0xff]  ;;  %166 = vmatprep.subr.bf16.mxu0 %v186_v14  ;;  %170 = vmatprep.mubr.msk.bf16.mxu0 %vm187_vm1, %v186_v14 }
   0x2   :  { %v24_v2 = vsel %vm23_vm0, %v21_v0, 0.0  ;;  %v27_v3 = vsel %vm23_vm0, %v22_v1, 0.0  ;;  %v176_v15 = vld [vmem:[%s253_s3] sm:$0xff]   ;;  %v177_v16 = vld [vmem:[%s253_s3 + $0x8] sm:$0xff]  }
   0x3   :  { %25 = vadd.xlane.f32.xlu0 %v24_v2  ;;  %167 = vmatpush3.bf16.msra.mxu0 %v176_v15  ;;  %v157_v33 = vld [vmem:[%s254_s1] ss:$0 sm:$0xff] }
   0x4   :  { %168 = vmatprep.subr.bf16.mxu0 %v186_v14  ;;  %v158_v39 = vld [vmem:[%s255_s2] ss:$0 sm:$0xff] }
   0x5   :  { %v159_v44 = vld [vmem:[%s256_s4] ss:$0 sm:$0xff] }
   0x7   :  { %28 = vadd.xlane.f32.xlu0 %v27_v3  ;;  %169 = vmatpush3.bf16.msra.mxu0 %v177_v16 }
  0x90   :  { %v26_v4 = vpop.xlane.xlu0 %25 }
  0x91   :  { %v31_v5 = vmul.f32 0.03125, %v26_v4 }
  0x93   :  { %v33_v6 = vsub.f32 %v21_v0, %v31_v5 }
  0x94   :  { %v29_v7 = vpop.xlane.xlu0 %28 }
  0x95   :  { %v32_v8 = vmul.f32 0.03125, %v29_v7  ;;  %v35_v9 = vmul.f32 %v33_v6, %v33_v6  ;;  %v70_v35 = vmul.f32 %v157_v33, %v33_v6 }
  0x97   :  { %v34_v10 = vsub.f32 %v22_v1, %v32_v8  ;;  %v37_v11 = vsel %vm23_vm0, %v35_v9, 0.0 }
  0x98   :  { %38 = vadd.xlane.f32.xlu1 %v37_v11 }
  0x99   :  { %v36_v12 = vmul.f32 %v34_v10, %v34_v10  ;;  %v71_v36 = vmul.f32 %v157_v33, %v34_v10 }
  0x9b   :  { %v40_v13 = vsel %vm23_vm0, %v36_v12, 0.0 }
  0x9c   :  { %41 = vadd.xlane.f32.xlu1 %v40_v13 }
 0x125   :  { %v39_v17 = vpop.xlane.xlu1 %38 }
 0x126   :  { %v43_v18 = vmul.f32 0.032258064, %v39_v17 }
 0x128   :  { %178 = vrsqrt.f32 %v43_v18  ;;  %vm47_vm2 = vcmp.eq.f32.partialorder %v43_v18, inf  ;;  %v50_v23 = vand.u32 2147483648, %v43_v18  ;;  %vm49_vm3 = vcmp.eq.f32.partialorder %v43_v18, 0.0 }
 0x129   :  { %v42_v19 = vpop.xlane.xlu1 %41 }
 0x12a   :  { %v44_v20 = vmul.f32 0.032258064, %v42_v19 }
 0x12c   :  { %180 = vrsqrt.f32 %v44_v20  ;;  %vm54_vm4 = vcmp.eq.f32.partialorder %v44_v20, inf  ;;  %v57_v29 = vand.u32 2147483648, %v44_v20  ;;  %vm56_vm5 = vcmp.eq.f32.partialorder %v44_v20, 0.0 }
 0x132   :  { %v179_v21 = vpop.eup %178 }
 0x133   :  { %v46_v22 = vmul.f32 %v179_v21, %v43_v18 }
 0x135   :  { %v48_v24 = vsel %vm47_vm2, %v43_v18, %v46_v22 }
 0x136   :  { %v181_v25 = vpop.eup %180  ;;  %v51_v26 = vsel %vm49_vm3, %v50_v23, %v48_v24 }
 0x137   :  { %v59_v27 = vadd.f32 1e-06, %v51_v26  ;;  %v53_v28 = vmul.f32 %v181_v25, %v44_v20 }
 0x139   :  { %182 = vrcp.f32 %v59_v27  ;;  %v55_v30 = vsel %vm54_vm4, %v44_v20, %v53_v28 }
 0x13a   :  { %v58_v31 = vsel %vm56_vm5, %v57_v29, %v55_v30 }
 0x13b   :  { %v60_v32 = vadd.f32 1e-06, %v58_v31 }
 0x13d   :  { %184 = vrcp.f32 %v60_v32 }
 0x143   :  { %v183_v34 = vpop.eup %182 }
 0x144   :  { %v72_v37 = vmul.f32 %v183_v34, %v70_v35 }
 0x146   :  { %v81_v41 = vadd.f32 %v158_v39, %v72_v37 }
 0x147   :  { %v185_v38 = vpop.eup %184 }
 0x148   :  { %v73_v40 = vmul.f32 %v185_v38, %v71_v36 }
 0x14a   :  { %v82_v42 = vadd.f32 %v158_v39, %v73_v40 }
 0x14c   :  { %v83_v43 = vpack.c.bf16 %v82_v42, %v81_v41 }
 0x14e   :  { %171 = vmatmul.mubr.msk.bf16.vlgmr.msra.gmra.mrb[0].mxu0 %vm23_vm0, %v83_v43 }
 0x221   :  { %v144_v45 = vpop.f32.mrb[0].mxu0 }
 0x222   :  { %v145_v46 = vadd.f32 %v159_v44, %v144_v45  ;;  %v172_v47 = vpop.f32.mrb[1].mxu0 }
 0x223   :  { %v147_v48 = vpop.f32.mrb[2].mxu0 }
 0x224   :  { %151 = vst.msk [vmem:[%s257_s5] sm:$0xff] %vm23_vm0, %v145_v46  ;;  %v148_v49 = vadd.f32 %v159_v44, %v147_v48  ;;  %v173_v50 = vpop.f32.mrb[3].mxu0 }
 0x226   :  { %152 = vst.msk [vmem:[%s257_s5 + $0x8] sm:$0xff] %vm23_vm0, %v148_v49 }

// kernel: transformer_forward.49
= control target key start
LH: loop header
LB: loop body
LE: loop exit
PB: predicated region body
PF: predicated region fallthrough
CT: control target
= control target key end

     0   :  { %vm24_vm0 = vcmask 261120   ;;  %s300_s0 = inlined_call_operand.vmem [shape: f32[16,32], index: 0, kind: input, shape index: {}]   ;;  %s301_s1 = inlined_call_operand.vmem [shape: f32[1,32], index: 1, kind: input, shape index: {}]   ;;  %s302_s2 = inlined_call_operand.vmem [shape: f32[1,32], index: 2, kind: input, shape index: {}]   ;;  %s303_s3 = inlined_call_operand.vmem [shape: bf16[32,16], index: 3, kind: input, shape index: {}]   ;;  %s304_s4 = inlined_call_operand.vmem [shape: f32[1,16], index: 4, kind: input, shape index: {}]   ;;  %s305_s5 = inlined_call_operand.hbm [shape: f32[16,16], index: 5, kind: output, shape index: {}]  }
   0x1   :  { %v22_v0 = vld [vmem:[%s300_s0] sm:$0xff]  ;;  %v23_v1 = vld [vmem:[%s300_s0 + $0x8] sm:$0xff] }
   0x2   :  { %v25_v2 = vsel %vm24_vm0, %v22_v0, 0.0 }
   0x3   :  { %26 = vadd.xlane.f32.xlu0 %v25_v2 }
   0x4   :  { %10 = vsyncpa [#allocation3], 0  ;;  %v28_v3 = vsel %vm24_vm0, %v23_v1, 0.0  ;;  %v193_v14 = vld [vmem:[%s303_s3] sm:$0xff]   ;;  %v227_v15 = vmov 0.0   ;;  %vm228_vm1 = vmmov 0  }
   0x5   :  { %180 = vmatprep.subr.bf16.mxu0 %v227_v15  ;;  %184 = vmatprep.mubr.msk.bf16.mxu0 %vm228_vm1, %v227_v15  ;;  %v194_v16 = vld [vmem:[%s303_s3 + $0x8] sm:$0xff]   ;;  %v171_v33 = vld [vmem:[%s301_s1] ss:$0 sm:$0xff]  ;;  %s229_s1 = smov [#allocation2]   ;;  %vm152_vm6 = vcmask 130048  }
   0x6   :  { %181 = vmatpush3.bf16.msra.mxu0 %v193_v14  ;;  %v172_v39 = vld [vmem:[%s302_s2] ss:$0 sm:$0xff]  ;;  %s160_s30 = sshll.u32 %s229_s1, 4  ;;  %s161_s30 = int_to_ptr.vmem [resolvable:$true] %s160_s30 }
   0x7   :  { %29 = vadd.xlane.f32.xlu0 %v28_v3  ;;  %182 = vmatprep.subr.bf16.mxu0 %v227_v15  ;;  %v173_v44 = vld [vmem:[%s304_s4] ss:$0 sm:$0xff]  ;;  %s203_s2 = scalar_lea.vmem %s161_s30, 256  ;;  %p208_p1 = scmp.lt.s32.totalorder %s161_s30, %s161_s30 }
   0x8   :  { %p204_p0 = scmp.ne.s32.totalorder %s161_s30, %s203_s2  ;;  %p209_p2 = scmp.lt.s32.totalorder %s203_s2, %s203_s2 }
   0xa   :  { %183 = vmatpush3.bf16.msra.mxu0 %v194_v16  ;;  %p210_p3 = por %p209_p2, %p208_p1 }
   0xc   :  { %p211_p4 = pnand %p210_p3, %p204_p0 }
  0x90   :  { %v27_v4 = vpop.xlane.xlu0 %26 }
  0x91   :  { %v32_v5 = vmul.f32 0.03125, %v27_v4 }
  0x93   :  { %v34_v6 = vsub.f32 %v22_v0, %v32_v5 }
  0x94   :  { %v30_v7 = vpop.xlane.xlu0 %29 }
  0x95   :  { %v33_v8 = vmul.f32 0.03125, %v30_v7  ;;  %v36_v9 = vmul.f32 %v34_v6, %v34_v6  ;;  %v71_v35 = vmul.f32 %v171_v33, %v34_v6 }
  0x97   :  { %v35_v10 = vsub.f32 %v23_v1, %v33_v8  ;;  %v38_v11 = vsel %vm24_vm0, %v36_v9, 0.0 }
  0x98   :  { %39 = vadd.xlane.f32.xlu1 %v38_v11 }
  0x99   :  { %v37_v12 = vmul.f32 %v35_v10, %v35_v10  ;;  %v72_v36 = vmul.f32 %v171_v33, %v35_v10 }
  0x9b   :  { %v41_v13 = vsel %vm24_vm0, %v37_v12, 0.0 }
  0x9c   :  { %42 = vadd.xlane.f32.xlu1 %v41_v13 }
 0x125   :  { %v40_v17 = vpop.xlane.xlu1 %39 }
 0x126   :  { %v44_v18 = vmul.f32 0.032258064, %v40_v17 }
 0x128   :  { %195 = vrsqrt.f32 %v44_v18  ;;  %vm48_vm2 = vcmp.eq.f32.partialorder %v44_v18, inf  ;;  %v51_v23 = vand.u32 2147483648, %v44_v18  ;;  %vm50_vm3 = vcmp.eq.f32.partialorder %v44_v18, 0.0 }
 0x129   :  { %v43_v19 = vpop.xlane.xlu1 %42 }
 0x12a   :  { %v45_v20 = vmul.f32 0.032258064, %v43_v19 }
 0x12c   :  { %197 = vrsqrt.f32 %v45_v20  ;;  %vm55_vm4 = vcmp.eq.f32.partialorder %v45_v20, inf  ;;  %v58_v29 = vand.u32 2147483648, %v45_v20  ;;  %vm57_vm5 = vcmp.eq.f32.partialorder %v45_v20, 0.0 }
 0x132   :  { %v196_v21 = vpop.eup %195 }
 0x133   :  { %v47_v22 = vmul.f32 %v196_v21, %v44_v18 }
 0x135   :  { %v49_v24 = vsel %vm48_vm2, %v44_v18, %v47_v22 }
 0x136   :  { %v198_v25 = vpop.eup %197  ;;  %v52_v26 = vsel %vm50_vm3, %v51_v23, %v49_v24 }
 0x137   :  { %v60_v27 = vadd.f32 1e-06, %v52_v26  ;;  %v54_v28 = vmul.f32 %v198_v25, %v45_v20 }
 0x139   :  { %199 = vrcp.f32 %v60_v27  ;;  %v56_v30 = vsel %vm55_vm4, %v45_v20, %v54_v28 }
 0x13a   :  { %v59_v31 = vsel %vm57_vm5, %v58_v29, %v56_v30 }
 0x13b   :  { %v61_v32 = vadd.f32 1e-06, %v59_v31 }
 0x13d   :  { %201 = vrcp.f32 %v61_v32 }
 0x143   :  { %v200_v34 = vpop.eup %199 }
 0x144   :  { %v73_v37 = vmul.f32 %v200_v34, %v71_v35 }
 0x146   :  { %v82_v41 = vadd.f32 %v172_v39, %v73_v37 }
 0x147   :  { %v202_v38 = vpop.eup %201 }
 0x148   :  { %v74_v40 = vmul.f32 %v202_v38, %v72_v36 }
 0x14a   :  { %v83_v42 = vadd.f32 %v172_v39, %v74_v40 }
 0x14c   :  { %v84_v43 = vpack.c.bf16 %v83_v42, %v82_v41 }
 0x14e   :  { %185 = vmatmul.mubr.msk.bf16.vlgmr.msra.gmra.mrb[0].mxu0 %vm24_vm0, %v84_v43 }
 0x221   :  { %v145_v45 = vpop.f32.mrb[0].mxu0 }
 0x222   :  { %v146_v46 = vadd.f32 %v173_v44, %v145_v45  ;;  %v186_v47 = vpop.f32.mrb[1].mxu0 }
 0x223   :  { %v148_v48 = vpop.f32.mrb[2].mxu0 }
 0x224   :  { %153 = vst.msk [vmem:[#allocation2] sm:$0xff] %vm152_vm6, %v146_v46  ;;  %v149_v49 = vadd.f32 %v173_v44, %v148_v48  ;;  %v187_v50 = vpop.f32.mrb[3].mxu0 }
 0x226   :  { %154 = vst.msk [vmem:[#allocation2 + $0x8] sm:$0xff] %vm152_vm6, %v149_v49 }
 0x227   :  { %214 = shalt.err (!%p211_p4)
}
 0x228   :  { %s215_s7 = scalar_lea.hbm %s305_s5, 256 }
 0x229   :  { %p216_p5 = scmp.ne.s32.totalorder %s305_s5, %s215_s7  ;;  %p219_p6 = scmp.lt.u32.totalorder %s215_s7, %s305_s5 }
 0x22b   :  { %p221_p7 = pnand %p219_p6, %p216_p5 }
 0x22d   :  { %224 = shalt.err (!%p221_p7)
}
 0x22e   :  { %s230_s12 = smov 128   ;;  %s231_s13 = smov 8  }
 0x22f   :  { %166 = dma.vmem_to_hbm [thread:$0]  %s161_s30, 256, %s305_s5, [#allocation3], %s230_s12, %s230_s12, %s231_s13  }
 0x230   :  { %225 = dma.done.wait [#allocation3], 256  }
 0x231   :  { %226 = vsyncadd [#allocation3], 4294967040 }
 0x232   :  { %170 = vsyncpa [#allocation3], 1 }

// kernel: transformer_forward.36
= control target key start
LH: loop header
LB: loop body
LE: loop exit
PB: predicated region body
PF: predicated region fallthrough
CT: control target
= control target key end

     0   :  { %s956_s15 = smov 0   ;;  %s1044_s0 = inlined_call_operand.vmem [shape: f32[2,4,8,8], index: 0, kind: input, shape index: {}]   ;;  %s1045_s1 = inlined_call_operand.vmem [shape: f32[2,4,8,8], index: 1, kind: input, shape index: {}]   ;;  %s1046_s2 = inlined_call_operand.vmem [shape: f32[2,4,8,8], index: 2, kind: input, shape index: {}]   ;;  %s1047_s3 = inlined_call_operand.vmem [shape: f32[2,8,8], index: 3, kind: input, shape index: {}]   ;;  %s1048_s4 = inlined_call_operand.vmem [shape: f32[2,4,8,8], index: 4, kind: output, shape index: {}]  }
   0x1 LB: > { %s803_s16 = sadd.s32 4294967295, %s927_s15   ;;  %p807_p0 = scmp.ge.s32.totalorder %s927_s15, 1  ;;  %s927_s15 = sphi %s956_s15, %s14_s15  }
   0x2   : > { %p191_p1 = scmp.lt.s32.totalorder %s927_s15, 3 }
   0x4   : > { %p192_p2 = pnand %p807_p0, %p191_p1 }
   0x5   : > { %p231_p3 = scmp.lt.s32.totalorder (!%p192_p2), %s803_s16, 1  ;;  %v929_v0 = vmov (!%p192_p2), 0.0   ;;  %vm930_vm0 = vmmov (!%p192_p2), 0   ;;  %vm281_vm1 = vcmask (!%p192_p2), 64512   ;;  %vm526_vm3 = vcmask (!%p192_p2), 1043456  }
   0x6   : > { %195 = sbr.rel (%p192_p2) target bundleno = 785 (0x311), region = 36  ;;  %847 = vmatprep.subr.bf16.mxu0 (!%p192_p2), %v929_v0  ;;  %853 = vmatprep.subr.bf16.mxu1 (!%p192_p2), %v929_v0 }
   0x7   : > { %849 = vmatprep.mubr.msk.bf16.mxu0 (!%p192_p2), %vm930_vm0, %v929_v0  ;;  %855 = vmatprep.mubr.msk.bf16.mxu1 (!%p192_p2), %vm930_vm0, %v929_v0 }
   0xd   : > { %s1050_s16 = smov (!%p231_p3, %s803_s16), 1 }
   0xe   : > { %s973_s17 = sshll.u32 %s1050_s16, 5  ;;  %s814_s24 = sshll.u32 %s1050_s16, 3 }
   0xf   : > { %s240_s20 = scalar_lea.vmem %s1045_s1, %s973_s17  ;;  %s235_s23 = scalar_lea.vmem %s1044_s0, %s973_s17 }
  0x10   : > { %v264_v1 = vld [vmem:[%s240_s20] sm:$0xff]  ;;  %v265_v2 = vld [vmem:[%s240_s20 + $0x8] sm:$0xff]  ;;  %v266_v5 = vld [vmem:[%s240_s20 + $0x10] sm:$0xff]  ;;  %s249_s27 = scalar_lea.vmem %s1047_s3, %s814_s24  ;;  %s245_s30 = scalar_lea.vmem %s1046_s2, %s973_s17 }
  0x11   : > { %v268_v3 = vpack.c.bf16 %v264_v1, %v264_v1  ;;  %v269_v4 = vpack.c.bf16 %v265_v2, %v265_v2  ;;  %v267_v6 = vld [vmem:[%s240_s20 + $0x18] sm:$0xff]  ;;  %v256_v9 = vld [vmem:[%s235_s23] sm:$0xff]  ;;  %v257_v10 = vld [vmem:[%s235_s23 + $0x8] sm:$0xff]  ;;  %v270_v11 = vpack.c.bf16 %v266_v5, %v266_v5  ;;  %s254_s7 = scalar_lea.vmem %s1048_s4, %s973_s17 }
  0x12   : > { %v271_v12 = vpack.c.bf16 %v267_v6, %v267_v6  ;;  %v260_v13 = vpack.c.bf16 %v256_v9, %v256_v9  ;;  %v261_v14 = vpack.c.bf16 %v257_v10, %v257_v10  ;;  %v258_v17 = vld [vmem:[%s235_s23 + $0x10] sm:$0xff]  ;;  %v259_v18 = vld [vmem:[%s235_s23 + $0x18] sm:$0xff]  ;;  %v280_v21 = vld [vmem:[%s249_s27] sm:$0xff] }
  0x13   : > { %v286_v7 = vsel %vm281_vm1, %v268_v3, 0  ;;  %v332_v8 = vsel %vm281_vm1, %v269_v4, 0  ;;  %v378_v15 = vsel %vm281_vm1, %v270_v11, 0  ;;  %v262_v19 = vpack.c.bf16 %v258_v17, %v258_v17  ;;  %v273_v10 = vld [vmem:[%s245_s30 + $0x8] sm:$0xff] }
  0x14   : > { %848 = vmatpush3.bf16.xpose.msra.mxu0 %v286_v7  ;;  %854 = vmatpush3.bf16.xpose.msra.mxu1 %v332_v8  ;;  %v424_v16 = vsel %vm281_vm1, %v271_v12, 0  ;;  %v263_v20 = vpack.c.bf16 %v259_v18, %v259_v18  ;;  %vm470_vm2 = vcmp.eq.f32.partialorder %v280_v21, 0.0  ;;  %v272_v7 = vld [vmem:[%s245_s30] sm:$0xff]  ;;  %v277_v11 = vpack.c.bf16 %v273_v10, %v273_v10 }
  0x15   : > { %859 = vmatprep.subr.bf16.mxu0 %v929_v0  ;;  %865 = vmatprep.subr.bf16.mxu1 %v929_v0  ;;  %v276_v8 = vpack.c.bf16 %v272_v7, %v272_v7 }
  0x16   : > { %v574_v12 = vsel %vm526_vm3, %v277_v11, 0 }
  0x17   : > { %v528_v9 = vsel %vm526_vm3, %v276_v8, 0 }
  0x1b   : > { %850 = vmatmul.mubr.msk.bf16.vlgmr.msra.gmra.mrb[0].mxu0 %vm281_vm1, %v260_v13  ;;  %856 = vmatmul.mubr.msk.bf16.vlgmr.msra.gmra.mrb[0].mxu1 %vm281_vm1, %v261_v14  ;;  %v274_v13 = vld [vmem:[%s245_s30 + $0x10] sm:$0xff] }
  0x1c   : > { %860 = vmatpush3.bf16.xpose.msra.mxu0 %v378_v15  ;;  %866 = vmatpush3.bf16.xpose.msra.mxu1 %v424_v16  ;;  %v278_v14 = vpack.c.bf16 %v274_v13, %v274_v13  ;;  %v275_v16 = vld [vmem:[%s245_s30 + $0x18] sm:$0xff] }
  0x1d   : > { %861 = vmatprep.mubr.msk.bf16.mxu0 %vm930_vm0, %v929_v0  ;;  %867 = vmatprep.mubr.msk.bf16.mxu1 %vm930_vm0, %v929_v0  ;;  %v279_v17 = vpack.c.bf16 %v275_v16, %v275_v16 }
  0x1e   : > { %871 = vmatprep.subr.bf16.mxu0 %v929_v0  ;;  %877 = vmatprep.subr.bf16.mxu1 %v929_v0  ;;  %v620_v15 = vsel %vm526_vm3, %v278_v14, 0 }
  0x1f   : > { %v666_v18 = vsel %vm526_vm3, %v279_v17, 0 }
  0x23   : > { %862 = vmatmul.mubr.msk.bf16.vlgmr.msra.gmra.mrb[4].mxu0 %vm281_vm1, %v262_v19  ;;  %868 = vmatmul.mubr.msk.bf16.vlgmr.msra.gmra.mrb[4].mxu1 %vm281_vm1, %v263_v20 }
  0x24   : > { %873 = vmatprep.mubr.msk.bf16.mxu0 %vm930_vm0, %v929_v0  ;;  %879 = vmatprep.mubr.msk.bf16.mxu1 %vm930_vm0, %v929_v0 }
  0x25   : > { %872 = vmatpush3.bf16.msra.mxu0 %v528_v9  ;;  %878 = vmatpush3.bf16.msra.mxu1 %v574_v12 }
  0x26   : > { %883 = vmatprep.subr.bf16.mxu0 %v929_v0  ;;  %889 = vmatprep.subr.bf16.mxu1 %v929_v0 }
  0xee   : > { %v322_v22 = vpop.f32.mrb[0].mxu0  ;;  %v368_v23 = vpop.f32.mrb[0].mxu1 }
  0xef   : > { %v466_v24 = vmul.f32 0.35355338, %v322_v22  ;;  %v851_v25 = vpop.f32.mrb[1].mxu0  ;;  %v467_v26 = vmul.f32 0.35355338, %v368_v23  ;;  %v857_v27 = vpop.f32.mrb[1].mxu1 }
  0xf0   : > { %v325_v28 = vpop.f32.mrb[2].mxu0  ;;  %v371_v29 = vpop.f32.mrb[2].mxu1 }
  0xf1   : > { %v852_v30 = vpop.f32.mrb[3].mxu0  ;;  %v858_v31 = vpop.f32.mrb[3].mxu1  ;;  %v471_v32 = vsel %vm470_vm2, -1e+09, %v466_v24  ;;  %v472_v33 = vsel %vm470_vm2, -1e+09, %v467_v26 }
  0xf2   : > { %v475_v34 = vsel %vm281_vm1, %v471_v32, -inf  ;;  %v478_v35 = vsel %vm281_vm1, %v472_v33, -inf }
  0xf3   : > { %476 = vmax.xlane.f32.xlu0 %v475_v34 }
  0xf6   : > { %v414_v36 = vpop.f32.mrb[4].mxu0  ;;  %v460_v37 = vpop.f32.mrb[4].mxu1 }
  0xf7   : > { %v468_v38 = vmul.f32 0.35355338, %v414_v36  ;;  %479 = vmax.xlane.f32.xlu0 %v478_v35  ;;  %v863_v39 = vpop.f32.mrb[5].mxu0  ;;  %v469_v40 = vmul.f32 0.35355338, %v460_v37  ;;  %v869_v41 = vpop.f32.mrb[5].mxu1 }
  0xf8   : > { %v417_v42 = vpop.f32.mrb[6].mxu0  ;;  %v463_v43 = vpop.f32.mrb[6].mxu1 }
  0xf9   : > { %v864_v44 = vpop.f32.mrb[7].mxu0  ;;  %v870_v45 = vpop.f32.mrb[7].mxu1  ;;  %v473_v46 = vsel %vm470_vm2, -1e+09, %v468_v38  ;;  %v474_v47 = vsel %vm470_vm2, -1e+09, %v469_v40 }
  0xfa   : > { %v481_v48 = vsel %vm281_vm1, %v473_v46, -inf  ;;  %v484_v49 = vsel %vm281_vm1, %v474_v47, -inf }
  0xfb   : > { %482 = vmax.xlane.f32.xlu1 %v481_v48 }
  0xff   : > { %485 = vmax.xlane.f32.xlu1 %v484_v49 }
 0x180   : > { %v477_v50 = vpop.xlane.xlu0 %476 }
 0x181   : > { %v487_v51 = vsub.f32 %v471_v32, %v477_v50 }
 0x183   : > { %v491_v52 = vmul.f32 1.442695, %v487_v51 }
 0x184   : > { %v480_v53 = vpop.xlane.xlu0 %479 }
 0x185   : > { %905 = vpow2.f32 %v491_v52  ;;  %v488_v54 = vsub.f32 %v472_v33, %v480_v53 }
 0x187   : > { %v493_v55 = vmul.f32 1.442695, %v488_v54 }
 0x188   : > { %v483_v56 = vpop.xlane.xlu1 %482 }
 0x189   : > { %907 = vpow2.f32 %v493_v55  ;;  %v489_v57 = vsub.f32 %v473_v46, %v483_v56 }
 0x18b   : > { %v495_v58 = vmul.f32 1.442695, %v489_v57 }
 0x18c   : > { %v486_v59 = vpop.xlane.xlu1 %485 }
 0x18d   : > { %909 = vpow2.f32 %v495_v58  ;;  %v490_v60 = vsub.f32 %v474_v47, %v486_v59 }
 0x18f   : > { %v906_v61 = vpop.eup %905  ;;  %v497_v62 = vmul.f32 1.442695, %v490_v60 }
 0x190   : > { %v499_v63 = vsel %vm281_vm1, %v906_v61, 0.0 }
 0x191   : > { %911 = vpow2.f32 %v497_v62  ;;  %500 = vadd.xlane.f32.xlu0 %v499_v63 }
 0x193   : > { %v908_v1 = vpop.eup %907 }
 0x194   : > { %v502_v2 = vsel %vm281_vm1, %v908_v1, 0.0 }
 0x195   : > { %503 = vadd.xlane.f32.xlu1 %v502_v2 }
 0x197   : > { %v910_v3 = vpop.eup %909 }
 0x198   : > { %v505_v4 = vsel %vm281_vm1, %v910_v3, 0.0 }
 0x199   : > { %506 = vadd.xlane.f32.xlu0 %v505_v4 }
 0x19b   : > { %v912_v5 = vpop.eup %911 }
 0x19c   : > { %v508_v6 = vsel %vm281_vm1, %v912_v5, 0.0 }
 0x19d   : > { %509 = vadd.xlane.f32.xlu1 %v508_v6 }
 0x21e   : > { %v501_v19 = vpop.xlane.xlu0 %500 }
 0x21f   : > { %913 = vrcp.f32 %v501_v19 }
 0x222   : > { %v504_v20 = vpop.xlane.xlu1 %503 }
 0x223   : > { %915 = vrcp.f32 %v504_v20 }
 0x226   : > { %v507_v21 = vpop.xlane.xlu0 %506 }
 0x227   : > { %917 = vrcp.f32 %v507_v21 }
 0x229   : > { %v914_v22 = vpop.eup %913 }
 0x22a   : > { %v515_v23 = vmul.f32 %v914_v22, %v906_v61  ;;  %v510_v24 = vpop.xlane.xlu1 %509 }
 0x22b   : > { %919 = vrcp.f32 %v510_v24 }
 0x22c   : > { %v519_v25 = vpack.c.bf16 %v515_v23, %v515_v23 }
 0x22d   : > { %v916_v26 = vpop.eup %915 }
 0x22e   : > { %v516_v27 = vmul.f32 %v916_v26, %v908_v1  ;;  %874 = vmatmul.mubr.msk.bf16.vlgmr.msra.gmra.mrb[8].mxu0 %vm281_vm1, %v519_v25 }
 0x22f   : > { %884 = vmatpush3.bf16.msra.mxu0 %v620_v15  ;;  %885 = vmatprep.mubr.msk.bf16.mxu0 %vm930_vm0, %v929_v0 }
 0x230   : > { %v520_v28 = vpack.c.bf16 %v516_v27, %v516_v27 }
 0x231   : > { %v918_v29 = vpop.eup %917 }
 0x232   : > { %v517_v30 = vmul.f32 %v918_v29, %v910_v3  ;;  %880 = vmatmul.mubr.msk.bf16.vlgmr.msra.gmra.mrb[8].mxu1 %vm281_vm1, %v520_v28 }
 0x233   : > { %890 = vmatpush3.bf16.msra.mxu1 %v666_v18  ;;  %891 = vmatprep.mubr.msk.bf16.mxu1 %vm930_vm0, %v929_v0 }
 0x234   : > { %v521_v31 = vpack.c.bf16 %v517_v30, %v517_v30 }
 0x235   : > { %v920_v32 = vpop.eup %919 }
 0x236   : > { %v518_v33 = vmul.f32 %v920_v32, %v912_v5  ;;  %886 = vmatmul.mubr.msk.bf16.vlgmr.msra.gmra.mrb[12].mxu0 %vm281_vm1, %v521_v31 }
 0x238   : > { %v522_v34 = vpack.c.bf16 %v518_v33, %v518_v33 }
 0x23a   : > { %892 = vmatmul.mubr.msk.bf16.vlgmr.msra.gmra.mrb[12].mxu1 %vm281_vm1, %v522_v34 }
 0x301   : > { %v564_v35 = vpop.f32.mrb[8].mxu0 }
 0x302   : > { %708 = vst.msk [vmem:[%s254_s7] sm:$0xff] %vm281_vm1, %v564_v35  ;;  %v875_v36 = vpop.f32.mrb[9].mxu0 }
 0x303   : > { %v567_v37 = vpop.f32.mrb[10].mxu0 }
 0x304   : > { %v876_v38 = vpop.f32.mrb[11].mxu0 }
 0x305   : > { %v610_v39 = vpop.f32.mrb[8].mxu1 }
 0x306   : > { %709 = vst.msk [vmem:[%s254_s7 + $0x8] sm:$0xff] %vm281_vm1, %v610_v39  ;;  %v881_v0 = vpop.f32.mrb[9].mxu1 }
 0x307   : > { %v613_v40 = vpop.f32.mrb[10].mxu1 }
 0x308   : > { %v882_v41 = vpop.f32.mrb[11].mxu1 }
 0x309   : > { %v656_v42 = vpop.f32.mrb[12].mxu0 }
 0x30a   : > { %710 = vst.msk [vmem:[%s254_s7 + $0x10] sm:$0xff] %vm281_vm1, %v656_v42  ;;  %v887_v43 = vpop.f32.mrb[13].mxu0 }
 0x30b   : > { %v659_v44 = vpop.f32.mrb[14].mxu0 }
 0x30c   : > { %v888_v45 = vpop.f32.mrb[15].mxu0 }
 0x30d   : > { %v702_v46 = vpop.f32.mrb[12].mxu1 }
 0x30e   : > { %711 = vst.msk [vmem:[%s254_s7 + $0x18] sm:$0xff] %vm281_vm1, %v702_v46  ;;  %v893_v47 = vpop.f32.mrb[13].mxu1 }
 0x30f   : > { %v705_v48 = vpop.f32.mrb[14].mxu1 }
 0x310   : > { %v894_v49 = vpop.f32.mrb[15].mxu1 }
 0x311 PF: > { %s14_s15 = sadd.s32 1, %s927_s15  }
 0x312   : > { %p11_p4 = scmp.ge.s32.totalorder %s14_s15, 4  }
 0x314   :  { %13 = sbr.rel (!%p11_p4) target bundleno = 1 (0x1), region = 75 }

</bundles_post_ra>
